<compile_context>
chip_gen: v5e
topology: v5e:2x2
jax: 0.10.0
libtpu: 0.0.40
codegen_flags: <defaults>
</compile_context>

<pallas_src>
import functools

import jax
import jax.numpy as jnp
from jax.experimental import pallas as pl
from jax.experimental.pallas import tpu as pltpu


def _convlstm_kernel(x_ref, c_ref, w_ref, b_ref, out_ref, acc_ref):
    # x_ref  : (1, Hp, Wp, Cin_total)  zero-padded concat([input, h_cur], ch), compute dtype
    # c_ref  : (1, TH*W, Chid)         current cell state row-tile (input dtype)
    # w_ref  : (KH, KW, Cin_total, 4*Chid) conv weight, compute dtype
    # b_ref  : (1, 4*Chid)             conv bias, f32
    # out_ref: (1, TH*W, 2*Chid)       packed [h_next | c_next]
    # acc_ref: (TH*W, 4*Chid) f32 VMEM scratch accumulator
    KH, KW, Cin_total, _ = w_ref.shape
    Wp = x_ref.shape[2]
    W = Wp - (KW - 1)
    P, Ch = c_ref.shape[1], c_ref.shape[2]
    TH = P // W

    row0 = pl.program_id(1) * TH  # first (unpadded) image row of this row tile

    # ---- convolution: unrolled taps, one MXU matmul each, f32 accumulation ----
    tap = 0
    for kh in range(KH):
        # contiguous full-width row slab for this kh tap, reused across all kw taps
        rows = x_ref[0, pl.ds(row0 + kh, TH), :, :]          # (TH, Wp, Cin_total)
        for kw in range(KW):
            patch = rows[:, kw:kw + W, :].reshape(P, Cin_total)
            contrib = jnp.dot(patch, w_ref[kh, kw],
                              preferred_element_type=jnp.float32)
            if tap == 0:
                acc_ref[...] = contrib                       # first tap initializes
            else:
                acc_ref[...] += contrib
            tap += 1

    acc = acc_ref[...] + b_ref[...]                          # (P, 4*Ch) f32

    # ---- gate nonlinearities on the packed 128-lane accumulator ----
    # channels are [i | f | o | g]; sigmoid for the first 3*Ch lanes, tanh for the
    # last Ch lanes, computed with a single tanh via sigmoid(x) = 0.5*tanh(x/2)+0.5.
    lane = jax.lax.broadcasted_iota(jnp.int32, acc.shape, 1)
    is_sig = lane < 3 * Ch
    t = jnp.tanh(jnp.where(is_sig, 0.5 * acc, acc))
    act = jnp.where(is_sig, 0.5 * t + 0.5, t)

    i_g = act[:, 0 * Ch:1 * Ch]
    f_g = act[:, 1 * Ch:2 * Ch]
    o_g = act[:, 2 * Ch:3 * Ch]
    g_g = act[:, 3 * Ch:4 * Ch]

    c_cur = c_ref[0].astype(jnp.float32)
    c_next = f_g * c_cur + i_g * g_g
    h_next = o_g * jnp.tanh(c_next)

    # packed [h | c] store -> single, lane-denser output block
    out_ref[0] = jnp.concatenate([h_next, c_next], axis=-1).astype(out_ref.dtype)


def _pick_row_tile(H, W, max_rows=512):
    """Largest row tile TH dividing H with TH*W <= max_rows (sublane aligned),
    preferring >= 2 row tiles so the pipeline / both v7x cores have work."""
    cands = [th for th in range(1, H + 1)
             if H % th == 0 and th * W <= max_rows and (th * W) % 8 == 0]
    if not cands:
        return H  # fall back: block == full array dims (always legal)
    proper = [th for th in cands if th < H]
    return max(proper) if proper else H


def convlstm_cell_forward_nhwc(x_nhwc, h_nhwc, c_nhwc, w_hwio, bias,
                               compute_dtype=jnp.bfloat16, row_tile=None):
    """ConvLSTMCell forward, channels-last (NHWC). Use this entry point inside a
    recurrent unroll so h/c stay NHWC across timesteps (no per-step transposes)."""
    B, H, W, Cin = x_nhwc.shape
    Chid = h_nhwc.shape[-1]
    KH, KW = int(w_hwio.shape[0]), int(w_hwio.shape[1])
    if KH % 2 != 1 or KW % 2 != 1:
        raise ValueError("ConvLSTMCell kernel assumes odd kernel sizes "
                         "(PyTorch padding=kernel_size//2 semantics).")
    ph, pw = KH // 2, KW // 2
    Hp, Wp = H + 2 * ph, W + 2 * pw
    Cin_total = Cin + Chid

    TH = int(row_tile) if row_tile is not None else _pick_row_tile(H, W)
    n_rt = H // TH
    P = TH * W

    # Glue (plain XLA): concat + spatial zero-pad of the conv input, cast of the
    # MXU operands to the compute dtype (bf16 halves weight/activation DMA bytes;
    # accumulation and all gate math stay f32 inside the kernel).
    # TODO(synk): for a full recurrent unroll, pass x and h separately with the weight
    # split into Wx/Wh and do in-kernel halo masking so this per-timestep concat+pad
    # HBM round trip disappears entirely.
    combined = jnp.concatenate([x_nhwc, h_nhwc], axis=-1).astype(compute_dtype)
    combined_p = jnp.pad(combined, ((0, 0), (ph, ph), (pw, pw), (0, 0)))

    c_flat = c_nhwc.reshape(B, H * W, Chid)
    w = w_hwio.astype(compute_dtype)
    b2 = bias.astype(jnp.float32).reshape(1, 4 * Chid)

    out = pl.pallas_call(
        _convlstm_kernel,
        out_shape=jax.ShapeDtypeStruct((B, H * W, 2 * Chid), c_nhwc.dtype),
        grid_spec=pltpu.PrefetchScalarGridSpec(
            num_scalar_prefetch=0,
            grid=(B, n_rt),
            in_specs=[
                # padded conv input: full image per batch element, VMEM-resident
                # across the row axis (index_map ignores r -> DMA'd once per b)
                pl.BlockSpec((1, Hp, Wp, Cin_total), lambda b, r: (b, 0, 0, 0)),
                pl.BlockSpec((1, P, Chid), lambda b, r: (b, r, 0)),
                pl.BlockSpec((KH, KW, Cin_total, 4 * Chid),
                             lambda b, r: (0, 0, 0, 0)),
                pl.BlockSpec((1, 4 * Chid), lambda b, r: (0, 0)),
            ],
            out_specs=pl.BlockSpec((1, P, 2 * Chid), lambda b, r: (b, r, 0)),
            scratch_shapes=[pltpu.VMEM((P, 4 * Chid), jnp.float32)],
        ),
        compiler_params=pltpu.CompilerParams(
            dimension_semantics=("parallel", "parallel")),
    )(combined_p, c_flat, w, b2)

    out = out.reshape(B, H, W, 2 * Chid)
    return out[..., :Chid], out[..., Chid:]


@functools.partial(jax.jit, static_argnames=("compute_dtype", "row_tile"))
def convlstm_cell_forward(x_nchw, h_nchw, c_nchw, weight_oihw, bias,
                          compute_dtype=jnp.bfloat16, row_tile=None):
    """ConvLSTMCell forward with PyTorch conventions (NCHW tensors, OIHW weight).
    NCHW<->NHWC relayout happens only here, at the model boundary."""
    x = jnp.transpose(x_nchw, (0, 2, 3, 1))
    h = jnp.transpose(h_nchw, (0, 2, 3, 1))
    c = jnp.transpose(c_nchw, (0, 2, 3, 1))
    w_hwio = jnp.transpose(weight_oihw, (2, 3, 1, 0))   # OIHW -> HWIO
    h_n, c_n = convlstm_cell_forward_nhwc(x, h, c, w_hwio, bias,
                                          compute_dtype=compute_dtype,
                                          row_tile=row_tile)
    return (jnp.transpose(h_n, (0, 3, 1, 2)),
            jnp.transpose(c_n, (0, 3, 1, 2)))


def _reference_forward(x, h, c, weight, bias):
    """Pure-JAX reference matching the PyTorch module (NCHW)."""
    combined = jnp.concatenate([x, h], axis=1)
    cc = jax.lax.conv_general_dilated(
        combined, weight, window_strides=(1, 1), padding="SAME",
        dimension_numbers=("NCHW", "OIHW", "NCHW"))
    cc = cc + bias[None, :, None, None]
    Chid = h.shape[1]
    cc_i, cc_f, cc_o, cc_g = jnp.split(cc, [Chid, 2 * Chid, 3 * Chid], axis=1)
    i = jax.nn.sigmoid(cc_i)
    f = jax.nn.sigmoid(cc_f)
    o = jax.nn.sigmoid(cc_o)
    g = jnp.tanh(cc_g)
    c_next = f * c + i * g
    h_next = o * jnp.tanh(c_next)
    return h_next, c_next


if __name__ == "__main__":
    # Small deterministic setup consistent with the module's __init__.
    B, Cin, H, W = 2, 4, 16, 16
    Chid = 32
    KH, KW = 3, 3

    key = jax.random.PRNGKey(0)
    kx, kh_key, kc_key, kw_key, kb_key = jax.random.split(key, 5)

    x = jax.random.normal(kx, (B, Cin, H, W), jnp.float32)
    h_cur = jax.random.normal(kh_key, (B, Chid, H, W), jnp.float32)
    c_cur = jax.random.normal(kc_key, (B, Chid, H, W), jnp.float32)

    # Conv2d(in=Cin+Chid, out=4*Chid, k=3, padding=1, bias=True) init bounds
    fan_in = (Cin + Chid) * KH * KW
    bound = 1.0 / (fan_in ** 0.5)
    weight = jax.random.uniform(kw_key, (4 * Chid, Cin + Chid, KH, KW),
                                jnp.float32, -bound, bound)
    bias = jax.random.uniform(kb_key, (4 * Chid,), jnp.float32, -bound, bound)

    h_expect, c_expect = _reference_forward(x, h_cur, c_cur, weight, bias)

    # Exact-precision path (f32 MXU operands): must match the reference tightly.
    h32, c32 = convlstm_cell_forward(x, h_cur, c_cur, weight, bias,
                                     compute_dtype=jnp.float32)
    jax.block_until_ready((h32, c32))
    assert jnp.allclose(h32, h_expect, atol=1e-4, rtol=1e-4)
    assert jnp.allclose(c32, c_expect, atol=1e-4, rtol=1e-4)

    # Fast path (bf16 MXU operands, f32 accumulation + f32 gate math).
    hbf, cbf = convlstm_cell_forward(x, h_cur, c_cur, weight, bias,
                                     compute_dtype=jnp.bfloat16)
    jax.block_until_ready((hbf, cbf))
    assert jnp.allclose(hbf, h_expect, atol=5e-2, rtol=5e-2)
    assert jnp.allclose(cbf, c_expect, atol=5e-2, rtol=5e-2)

    print("KERNEL_OK")
</pallas_src>

<mosaic_0001>
module attributes {stable_mosaic.version = 11 : i64} {
  func.func @_convlstm_kernel(%arg0: i32, %arg1: i32, %arg2: memref<1x18x18x36xf32, #tpu.memory_space<vmem>>, %arg3: memref<1x128x32xf32, #tpu.memory_space<vmem>>, %arg4: memref<3x3x36x128xf32, #tpu.memory_space<vmem>>, %arg5: memref<1x128xf32, #tpu.memory_space<vmem>>, %arg6: memref<1x128x64xf32, #tpu.memory_space<vmem>>, %arg7: memref<128x128xf32, #tpu.memory_space<vmem>>) attributes {dimension_semantics = [#tpu.dimension_semantics<parallel>, #tpu.dimension_semantics<parallel>], iteration_bounds = array<i64: 2, 2>, scalar_prefetch = 0 : i64, scratch_operands = 1 : i64, tpu.core_type = #tpu.core_type<tc>, window_params = [{transform_indices = @transform_0, window_bounds = array<i64: 1, 18, 18, 36>}, {transform_indices = @transform_1, window_bounds = array<i64: 1, 128, 32>}, {pipeline_mode = #tpu.pipeline_mode<synchronous>, transform_indices = @transform_2, window_bounds = array<i64: 3, 3, 36, 128>}, {pipeline_mode = #tpu.pipeline_mode<synchronous>, transform_indices = @transform_3, window_bounds = array<i64: 1, 128>}, {transform_indices = @transform_4, window_bounds = array<i64: 1, 128, 64>}]} {
    %c8_i32 = arith.constant 8 : i32
    %0 = arith.muli %arg1, %c8_i32 : i32
    %c0_i32 = arith.constant 0 : i32
    %1 = arith.addi %0, %c0_i32 : i32
    %c0 = arith.constant 0 : index
    %2 = arith.index_cast %1 : i32 to index
    %c0_0 = arith.constant 0 : index
    %c0_1 = arith.constant 0 : index
    %3 = vector.load %arg2[%c0, %2, %c0_0, %c0_1] : memref<1x18x18x36xf32, #tpu.memory_space<vmem>>, vector<1x8x18x36xf32>
    %4 = vector.shape_cast %3 : vector<1x8x18x36xf32> to vector<8x18x36xf32>
    %5 = vector.extract_strided_slice %4 {offsets = [0, 0, 0], sizes = [8, 16, 36], strides = [1, 1, 1]} : vector<8x18x36xf32> to vector<8x16x36xf32>
    %6 = vector.shape_cast %5 : vector<8x16x36xf32> to vector<128x36xf32>
    %c0_2 = arith.constant 0 : index
    %c0_3 = arith.constant 0 : index
    %c0_4 = arith.constant 0 : index
    %c0_5 = arith.constant 0 : index
    %7 = vector.load %arg4[%c0_2, %c0_3, %c0_4, %c0_5] : memref<3x3x36x128xf32, #tpu.memory_space<vmem>>, vector<1x1x36x128xf32>
    %8 = vector.shape_cast %7 : vector<1x1x36x128xf32> to vector<36x128xf32>
    %cst = arith.constant dense<0.000000e+00> : vector<128x128xf32>
    %9 = tpu.matmul %6, %8, %cst {dimension_numbers = #tpu.dot_dimension_numbers<[1], [0], [0], [1], [0, 0, 1, 1], [], []>} : vector<128x36xf32>, vector<36x128xf32>, vector<128x128xf32> -> vector<128x128xf32>
    %c0_6 = arith.constant 0 : index
    %c0_7 = arith.constant 0 : index
    %10 = vector.load %arg7[%c0_6, %c0_7] : memref<128x128xf32, #tpu.memory_space<vmem>>, vector<128x128xf32>
    tpu.vector_store %arg7[%c0_6, %c0_7], %9 {strides = array<i32>} : memref<128x128xf32, #tpu.memory_space<vmem>>, vector<128x128xf32>,
    %11 = vector.extract_strided_slice %4 {offsets = [0, 1, 0], sizes = [8, 16, 36], strides = [1, 1, 1]} : vector<8x18x36xf32> to vector<8x16x36xf32>
    %12 = vector.shape_cast %11 : vector<8x16x36xf32> to vector<128x36xf32>
    %c0_8 = arith.constant 0 : index
    %c1 = arith.constant 1 : index
    %c0_9 = arith.constant 0 : index
    %c0_10 = arith.constant 0 : index
    %13 = vector.load %arg4[%c0_8, %c1, %c0_9, %c0_10] : memref<3x3x36x128xf32, #tpu.memory_space<vmem>>, vector<1x1x36x128xf32>
    %14 = vector.shape_cast %13 : vector<1x1x36x128xf32> to vector<36x128xf32>
    %cst_11 = arith.constant dense<0.000000e+00> : vector<128x128xf32>
    %15 = tpu.matmul %12, %14, %cst_11 {dimension_numbers = #tpu.dot_dimension_numbers<[1], [0], [0], [1], [0, 0, 1, 1], [], []>} : vector<128x36xf32>, vector<36x128xf32>, vector<128x128xf32> -> vector<128x128xf32>
    %c0_12 = arith.constant 0 : index
    %c0_13 = arith.constant 0 : index
    %16 = vector.load %arg7[%c0_12, %c0_13] : memref<128x128xf32, #tpu.memory_space<vmem>>, vector<128x128xf32>
    %17 = arith.addf %16, %15 : vector<128x128xf32>
    %c0_14 = arith.constant 0 : index
    %c0_15 = arith.constant 0 : index
    %18 = vector.load %arg7[%c0_14, %c0_15] : memref<128x128xf32, #tpu.memory_space<vmem>>, vector<128x128xf32>
    tpu.vector_store %arg7[%c0_14, %c0_15], %17 {strides = array<i32>} : memref<128x128xf32, #tpu.memory_space<vmem>>, vector<128x128xf32>,
    %19 = vector.extract_strided_slice %4 {offsets = [0, 2, 0], sizes = [8, 16, 36], strides = [1, 1, 1]} : vector<8x18x36xf32> to vector<8x16x36xf32>
    %20 = vector.shape_cast %19 : vector<8x16x36xf32> to vector<128x36xf32>
    %c0_16 = arith.constant 0 : index
    %c2 = arith.constant 2 : index
    %c0_17 = arith.constant 0 : index
    %c0_18 = arith.constant 0 : index
    %21 = vector.load %arg4[%c0_16, %c2, %c0_17, %c0_18] : memref<3x3x36x128xf32, #tpu.memory_space<vmem>>, vector<1x1x36x128xf32>
    %22 = vector.shape_cast %21 : vector<1x1x36x128xf32> to vector<36x128xf32>
    %cst_19 = arith.constant dense<0.000000e+00> : vector<128x128xf32>
    %23 = tpu.matmul %20, %22, %cst_19 {dimension_numbers = #tpu.dot_dimension_numbers<[1], [0], [0], [1], [0, 0, 1, 1], [], []>} : vector<128x36xf32>, vector<36x128xf32>, vector<128x128xf32> -> vector<128x128xf32>
    %c0_20 = arith.constant 0 : index
    %c0_21 = arith.constant 0 : index
    %24 = vector.load %arg7[%c0_20, %c0_21] : memref<128x128xf32, #tpu.memory_space<vmem>>, vector<128x128xf32>
    %25 = arith.addf %24, %23 : vector<128x128xf32>
    %c0_22 = arith.constant 0 : index
    %c0_23 = arith.constant 0 : index
    %26 = vector.load %arg7[%c0_22, %c0_23] : memref<128x128xf32, #tpu.memory_space<vmem>>, vector<128x128xf32>
    tpu.vector_store %arg7[%c0_22, %c0_23], %25 {strides = array<i32>} : memref<128x128xf32, #tpu.memory_space<vmem>>, vector<128x128xf32>,
    %c1_i32 = arith.constant 1 : i32
    %27 = arith.addi %0, %c1_i32 : i32
    %c0_24 = arith.constant 0 : index
    %28 = arith.index_cast %27 : i32 to index
    %c0_25 = arith.constant 0 : index
    %c0_26 = arith.constant 0 : index
    %29 = vector.load %arg2[%c0_24, %28, %c0_25, %c0_26] : memref<1x18x18x36xf32, #tpu.memory_space<vmem>>, vector<1x8x18x36xf32>
    %30 = vector.shape_cast %29 : vector<1x8x18x36xf32> to vector<8x18x36xf32>
    %31 = vector.extract_strided_slice %30 {offsets = [0, 0, 0], sizes = [8, 16, 36], strides = [1, 1, 1]} : vector<8x18x36xf32> to vector<8x16x36xf32>
    %32 = vector.shape_cast %31 : vector<8x16x36xf32> to vector<128x36xf32>
    %c1_27 = arith.constant 1 : index
    %c0_28 = arith.constant 0 : index
    %c0_29 = arith.constant 0 : index
    %c0_30 = arith.constant 0 : index
    %33 = vector.load %arg4[%c1_27, %c0_28, %c0_29, %c0_30] : memref<3x3x36x128xf32, #tpu.memory_space<vmem>>, vector<1x1x36x128xf32>
    %34 = vector.shape_cast %33 : vector<1x1x36x128xf32> to vector<36x128xf32>
    %cst_31 = arith.constant dense<0.000000e+00> : vector<128x128xf32>
    %35 = tpu.matmul %32, %34, %cst_31 {dimension_numbers = #tpu.dot_dimension_numbers<[1], [0], [0], [1], [0, 0, 1, 1], [], []>} : vector<128x36xf32>, vector<36x128xf32>, vector<128x128xf32> -> vector<128x128xf32>
    %c0_32 = arith.constant 0 : index
    %c0_33 = arith.constant 0 : index
    %36 = vector.load %arg7[%c0_32, %c0_33] : memref<128x128xf32, #tpu.memory_space<vmem>>, vector<128x128xf32>
    %37 = arith.addf %36, %35 : vector<128x128xf32>
    %c0_34 = arith.constant 0 : index
    %c0_35 = arith.constant 0 : index
    %38 = vector.load %arg7[%c0_34, %c0_35] : memref<128x128xf32, #tpu.memory_space<vmem>>, vector<128x128xf32>
    tpu.vector_store %arg7[%c0_34, %c0_35], %37 {strides = array<i32>} : memref<128x128xf32, #tpu.memory_space<vmem>>, vector<128x128xf32>,
    %39 = vector.extract_strided_slice %30 {offsets = [0, 1, 0], sizes = [8, 16, 36], strides = [1, 1, 1]} : vector<8x18x36xf32> to vector<8x16x36xf32>
    %40 = vector.shape_cast %39 : vector<8x16x36xf32> to vector<128x36xf32>
    %c1_36 = arith.constant 1 : index
    %c1_37 = arith.constant 1 : index
    %c0_38 = arith.constant 0 : index
    %c0_39 = arith.constant 0 : index
    %41 = vector.load %arg4[%c1_36, %c1_37, %c0_38, %c0_39] : memref<3x3x36x128xf32, #tpu.memory_space<vmem>>, vector<1x1x36x128xf32>
    %42 = vector.shape_cast %41 : vector<1x1x36x128xf32> to vector<36x128xf32>
    %cst_40 = arith.constant dense<0.000000e+00> : vector<128x128xf32>
    %43 = tpu.matmul %40, %42, %cst_40 {dimension_numbers = #tpu.dot_dimension_numbers<[1], [0], [0], [1], [0, 0, 1, 1], [], []>} : vector<128x36xf32>, vector<36x128xf32>, vector<128x128xf32> -> vector<128x128xf32>
    %c0_41 = arith.constant 0 : index
    %c0_42 = arith.constant 0 : index
    %44 = vector.load %arg7[%c0_41, %c0_42] : memref<128x128xf32, #tpu.memory_space<vmem>>, vector<128x128xf32>
    %45 = arith.addf %44, %43 : vector<128x128xf32>
    %c0_43 = arith.constant 0 : index
    %c0_44 = arith.constant 0 : index
    %46 = vector.load %arg7[%c0_43, %c0_44] : memref<128x128xf32, #tpu.memory_space<vmem>>, vector<128x128xf32>
    tpu.vector_store %arg7[%c0_43, %c0_44], %45 {strides = array<i32>} : memref<128x128xf32, #tpu.memory_space<vmem>>, vector<128x128xf32>,
    %47 = vector.extract_strided_slice %30 {offsets = [0, 2, 0], sizes = [8, 16, 36], strides = [1, 1, 1]} : vector<8x18x36xf32> to vector<8x16x36xf32>
    %48 = vector.shape_cast %47 : vector<8x16x36xf32> to vector<128x36xf32>
    %c1_45 = arith.constant 1 : index
    %c2_46 = arith.constant 2 : index
    %c0_47 = arith.constant 0 : index
    %c0_48 = arith.constant 0 : index
    %49 = vector.load %arg4[%c1_45, %c2_46, %c0_47, %c0_48] : memref<3x3x36x128xf32, #tpu.memory_space<vmem>>, vector<1x1x36x128xf32>
    %50 = vector.shape_cast %49 : vector<1x1x36x128xf32> to vector<36x128xf32>
    %cst_49 = arith.constant dense<0.000000e+00> : vector<128x128xf32>
    %51 = tpu.matmul %48, %50, %cst_49 {dimension_numbers = #tpu.dot_dimension_numbers<[1], [0], [0], [1], [0, 0, 1, 1], [], []>} : vector<128x36xf32>, vector<36x128xf32>, vector<128x128xf32> -> vector<128x128xf32>
    %c0_50 = arith.constant 0 : index
    %c0_51 = arith.constant 0 : index
    %52 = vector.load %arg7[%c0_50, %c0_51] : memref<128x128xf32, #tpu.memory_space<vmem>>, vector<128x128xf32>
    %53 = arith.addf %52, %51 : vector<128x128xf32>
    %c0_52 = arith.constant 0 : index
    %c0_53 = arith.constant 0 : index
    %54 = vector.load %arg7[%c0_52, %c0_53] : memref<128x128xf32, #tpu.memory_space<vmem>>, vector<128x128xf32>
    tpu.vector_store %arg7[%c0_52, %c0_53], %53 {strides = array<i32>} : memref<128x128xf32, #tpu.memory_space<vmem>>, vector<128x128xf32>,
    %c2_i32 = arith.constant 2 : i32
    %55 = arith.addi %0, %c2_i32 : i32
    %c0_54 = arith.constant 0 : index
    %56 = arith.index_cast %55 : i32 to index
    %c0_55 = arith.constant 0 : index
    %c0_56 = arith.constant 0 : index
    %57 = vector.load %arg2[%c0_54, %56, %c0_55, %c0_56] : memref<1x18x18x36xf32, #tpu.memory_space<vmem>>, vector<1x8x18x36xf32>
    %58 = vector.shape_cast %57 : vector<1x8x18x36xf32> to vector<8x18x36xf32>
    %59 = vector.extract_strided_slice %58 {offsets = [0, 0, 0], sizes = [8, 16, 36], strides = [1, 1, 1]} : vector<8x18x36xf32> to vector<8x16x36xf32>
    %60 = vector.shape_cast %59 : vector<8x16x36xf32> to vector<128x36xf32>
    %c2_57 = arith.constant 2 : index
    %c0_58 = arith.constant 0 : index
    %c0_59 = arith.constant 0 : index
    %c0_60 = arith.constant 0 : index
    %61 = vector.load %arg4[%c2_57, %c0_58, %c0_59, %c0_60] : memref<3x3x36x128xf32, #tpu.memory_space<vmem>>, vector<1x1x36x128xf32>
    %62 = vector.shape_cast %61 : vector<1x1x36x128xf32> to vector<36x128xf32>
    %cst_61 = arith.constant dense<0.000000e+00> : vector<128x128xf32>
    %63 = tpu.matmul %60, %62, %cst_61 {dimension_numbers = #tpu.dot_dimension_numbers<[1], [0], [0], [1], [0, 0, 1, 1], [], []>} : vector<128x36xf32>, vector<36x128xf32>, vector<128x128xf32> -> vector<128x128xf32>
    %c0_62 = arith.constant 0 : index
    %c0_63 = arith.constant 0 : index
    %64 = vector.load %arg7[%c0_62, %c0_63] : memref<128x128xf32, #tpu.memory_space<vmem>>, vector<128x128xf32>
    %65 = arith.addf %64, %63 : vector<128x128xf32>
    %c0_64 = arith.constant 0 : index
    %c0_65 = arith.constant 0 : index
    %66 = vector.load %arg7[%c0_64, %c0_65] : memref<128x128xf32, #tpu.memory_space<vmem>>, vector<128x128xf32>
    tpu.vector_store %arg7[%c0_64, %c0_65], %65 {strides = array<i32>} : memref<128x128xf32, #tpu.memory_space<vmem>>, vector<128x128xf32>,
    %67 = vector.extract_strided_slice %58 {offsets = [0, 1, 0], sizes = [8, 16, 36], strides = [1, 1, 1]} : vector<8x18x36xf32> to vector<8x16x36xf32>
    %68 = vector.shape_cast %67 : vector<8x16x36xf32> to vector<128x36xf32>
    %c2_66 = arith.constant 2 : index
    %c1_67 = arith.constant 1 : index
    %c0_68 = arith.constant 0 : index
    %c0_69 = arith.constant 0 : index
    %69 = vector.load %arg4[%c2_66, %c1_67, %c0_68, %c0_69] : memref<3x3x36x128xf32, #tpu.memory_space<vmem>>, vector<1x1x36x128xf32>
    %70 = vector.shape_cast %69 : vector<1x1x36x128xf32> to vector<36x128xf32>
    %cst_70 = arith.constant dense<0.000000e+00> : vector<128x128xf32>
    %71 = tpu.matmul %68, %70, %cst_70 {dimension_numbers = #tpu.dot_dimension_numbers<[1], [0], [0], [1], [0, 0, 1, 1], [], []>} : vector<128x36xf32>, vector<36x128xf32>, vector<128x128xf32> -> vector<128x128xf32>
    %c0_71 = arith.constant 0 : index
    %c0_72 = arith.constant 0 : index
    %72 = vector.load %arg7[%c0_71, %c0_72] : memref<128x128xf32, #tpu.memory_space<vmem>>, vector<128x128xf32>
    %73 = arith.addf %72, %71 : vector<128x128xf32>
    %c0_73 = arith.constant 0 : index
    %c0_74 = arith.constant 0 : index
    %74 = vector.load %arg7[%c0_73, %c0_74] : memref<128x128xf32, #tpu.memory_space<vmem>>, vector<128x128xf32>
    tpu.vector_store %arg7[%c0_73, %c0_74], %73 {strides = array<i32>} : memref<128x128xf32, #tpu.memory_space<vmem>>, vector<128x128xf32>,
    %75 = vector.extract_strided_slice %58 {offsets = [0, 2, 0], sizes = [8, 16, 36], strides = [1, 1, 1]} : vector<8x18x36xf32> to vector<8x16x36xf32>
    %76 = vector.shape_cast %75 : vector<8x16x36xf32> to vector<128x36xf32>
    %c2_75 = arith.constant 2 : index
    %c2_76 = arith.constant 2 : index
    %c0_77 = arith.constant 0 : index
    %c0_78 = arith.constant 0 : index
    %77 = vector.load %arg4[%c2_75, %c2_76, %c0_77, %c0_78] : memref<3x3x36x128xf32, #tpu.memory_space<vmem>>, vector<1x1x36x128xf32>
    %78 = vector.shape_cast %77 : vector<1x1x36x128xf32> to vector<36x128xf32>
    %cst_79 = arith.constant dense<0.000000e+00> : vector<128x128xf32>
    %79 = tpu.matmul %76, %78, %cst_79 {dimension_numbers = #tpu.dot_dimension_numbers<[1], [0], [0], [1], [0, 0, 1, 1], [], []>} : vector<128x36xf32>, vector<36x128xf32>, vector<128x128xf32> -> vector<128x128xf32>
    %c0_80 = arith.constant 0 : index
    %c0_81 = arith.constant 0 : index
    %80 = vector.load %arg7[%c0_80, %c0_81] : memref<128x128xf32, #tpu.memory_space<vmem>>, vector<128x128xf32>
    %81 = arith.addf %80, %79 : vector<128x128xf32>
    %c0_82 = arith.constant 0 : index
    %c0_83 = arith.constant 0 : index
    %82 = vector.load %arg7[%c0_82, %c0_83] : memref<128x128xf32, #tpu.memory_space<vmem>>, vector<128x128xf32>
    tpu.vector_store %arg7[%c0_82, %c0_83], %81 {strides = array<i32>} : memref<128x128xf32, #tpu.memory_space<vmem>>, vector<128x128xf32>,
    %c0_84 = arith.constant 0 : index
    %c0_85 = arith.constant 0 : index
    %83 = vector.load %arg7[%c0_84, %c0_85] : memref<128x128xf32, #tpu.memory_space<vmem>>, vector<128x128xf32>
    %c0_86 = arith.constant 0 : index
    %c0_87 = arith.constant 0 : index
    %84 = vector.load %arg5[%c0_86, %c0_87] : memref<1x128xf32, #tpu.memory_space<vmem>>, vector<1x128xf32>
    %85 = vector.broadcast %84 : vector<1x128xf32> to vector<128x128xf32>
    %86 = arith.addf %83, %85 : vector<128x128xf32>
    %87 = tpu.iota {dimensions = array<i32: 1>} : vector<128x128xi32>
    %c96_i32 = arith.constant 96 : i32
    %88 = vector.broadcast %c96_i32 : i32 to vector<128x128xi32>
    %89 = arith.cmpi slt, %87, %88 : vector<128x128xi32>
    %cst_88 = arith.constant 5.000000e-01 : f32
    %90 = vector.broadcast %cst_88 : f32 to vector<128x128xf32>
    %91 = arith.mulf %90, %86 : vector<128x128xf32>
    %92 = arith.select %89, %91, %86 : vector<128x128xi1>, vector<128x128xf32>
    %93 = math.tanh %92 : vector<128x128xf32>
    %cst_89 = arith.constant 5.000000e-01 : f32
    %94 = vector.broadcast %cst_89 : f32 to vector<128x128xf32>
    %95 = arith.mulf %94, %93 : vector<128x128xf32>
    %cst_90 = arith.constant 5.000000e-01 : f32
    %96 = vector.broadcast %cst_90 : f32 to vector<128x128xf32>
    %97 = arith.addf %95, %96 : vector<128x128xf32>
    %98 = arith.select %89, %97, %93 : vector<128x128xi1>, vector<128x128xf32>
    %99 = vector.extract_strided_slice %98 {offsets = [0, 0], sizes = [128, 32], strides = [1, 1]} : vector<128x128xf32> to vector<128x32xf32>
    %100 = vector.extract_strided_slice %98 {offsets = [0, 32], sizes = [128, 32], strides = [1, 1]} : vector<128x128xf32> to vector<128x32xf32>
    %101 = vector.extract_strided_slice %98 {offsets = [0, 64], sizes = [128, 32], strides = [1, 1]} : vector<128x128xf32> to vector<128x32xf32>
    %102 = vector.extract_strided_slice %98 {offsets = [0, 96], sizes = [128, 32], strides = [1, 1]} : vector<128x128xf32> to vector<128x32xf32>
    %c0_91 = arith.constant 0 : index
    %c0_92 = arith.constant 0 : index
    %c0_93 = arith.constant 0 : index
    %103 = vector.load %arg3[%c0_91, %c0_92, %c0_93] : memref<1x128x32xf32, #tpu.memory_space<vmem>>, vector<1x128x32xf32>
    %104 = vector.shape_cast %103 : vector<1x128x32xf32> to vector<128x32xf32>
    %105 = arith.mulf %100, %104 : vector<128x32xf32>
    %106 = arith.mulf %99, %102 : vector<128x32xf32>
    %107 = arith.addf %105, %106 : vector<128x32xf32>
    %108 = math.tanh %107 : vector<128x32xf32>
    %109 = arith.mulf %101, %108 : vector<128x32xf32>
    %110 = tpu.concatenate %109, %107 in 1 : vector<128x32xf32>, vector<128x32xf32> -> vector<128x64xf32>
    %c0_94 = arith.constant 0 : index
    %c0_95 = arith.constant 0 : index
    %c0_96 = arith.constant 0 : index
    %111 = vector.load %arg6[%c0_94, %c0_95, %c0_96] : memref<1x128x64xf32, #tpu.memory_space<vmem>>, vector<1x128x64xf32>
    %112 = vector.shape_cast %111 : vector<1x128x64xf32> to vector<128x64xf32>
    %113 = vector.shape_cast %110 : vector<128x64xf32> to vector<1x128x64xf32>
    tpu.vector_store %arg6[%c0_94, %c0_95, %c0_96], %113 {strides = array<i32>} : memref<1x128x64xf32, #tpu.memory_space<vmem>>, vector<1x128x64xf32>,
    return
  }
  func.func @transform_0(%arg0: i32, %arg1: i32) -> (i32, i32, i32, i32) {
    %c0_i32 = arith.constant 0 : i32
    %c0_i32_0 = arith.constant 0 : i32
    %c0_i32_1 = arith.constant 0 : i32
    %c0_i32_2 = arith.constant 0 : i32
    return %arg0, %c0_i32, %c0_i32_0, %c0_i32_1 : i32, i32, i32, i32
  }
  func.func @transform_1(%arg0: i32, %arg1: i32) -> (i32, i32, i32) {
    %c0_i32 = arith.constant 0 : i32
    %c0_i32_0 = arith.constant 0 : i32
    return %arg0, %arg1, %c0_i32 : i32, i32, i32
  }
  func.func @transform_2(%arg0: i32, %arg1: i32) -> (i32, i32, i32, i32) {
    %c0_i32 = arith.constant 0 : i32
    %c0_i32_0 = arith.constant 0 : i32
    %c0_i32_1 = arith.constant 0 : i32
    %c0_i32_2 = arith.constant 0 : i32
    %c0_i32_3 = arith.constant 0 : i32
    return %c0_i32, %c0_i32_0, %c0_i32_1, %c0_i32_2 : i32, i32, i32, i32
  }
  func.func @transform_3(%arg0: i32, %arg1: i32) -> (i32, i32) {
    %c0_i32 = arith.constant 0 : i32
    %c0_i32_0 = arith.constant 0 : i32
    %c0_i32_1 = arith.constant 0 : i32
    return %c0_i32, %c0_i32_0 : i32, i32
  }
  func.func @transform_4(%arg0: i32, %arg1: i32) -> (i32, i32, i32) {
    %c0_i32 = arith.constant 0 : i32
    %c0_i32_0 = arith.constant 0 : i32
    return %arg0, %arg1, %c0_i32 : i32, i32, i32
  }
}

</mosaic_0001>

<bundles_post_ra>
// kernel: convlstm_cell_forward.1
= control target key start
LH: loop header
LB: loop body
LE: loop exit
PB: predicated region body
PF: predicated region fallthrough
CT: control target
= control target key end

     0   :  { %s3155_s15 = smov 0   ;;  %s3157_s16 = smov 0   ;;  %s4455_s0 = inlined_call_operand.vmem [shape: f32[2,18,18,36], index: 0, kind: input, shape index: {}]   ;;  %s4456_s1 = inlined_call_operand.vmem [shape: f32[2,256,32], index: 1, kind: input, shape index: {}]   ;;  %s4457_s2 = inlined_call_operand.vmem [shape: f32[3,3,36,128], index: 2, kind: input, shape index: {}]   ;;  %s4458_s3 = inlined_call_operand.vmem [shape: f32[1,128], index: 3, kind: input, shape index: {}]   ;;  %s4459_s4 = inlined_call_operand.vmem [shape: f32[2,256,64], index: 4, kind: output, shape index: {}]  }
   0x1   :  { %s3159_s17 = smov 0   ;;  %s3161_s18 = smov 0  }
   0x2   :  { %s3163_s19 = smov 0  }
   0x3 LB: > { %s23_s20 = sadd.s32 1, %s3118_s17  ;;  %s26_s21 = sadd.s32 1, %s3122_s18  ;;  %s3126_s19 = sphi %s3163_s19, %s14_s19   ;;  %s3122_s18 = sphi %s3161_s18, %s4478_s18   ;;  %s3118_s17 = sphi %s3159_s17, %s4477_s17   ;;  %s3114_s16 = sphi %s3157_s16, %s4476_s16   ;;  %s3110_s15 = sphi %s3155_s15, %s4475_s15  }
   0x4   : > { %p24_p0 = scmp.ge.s32.totalorder %s23_s20, 2  ;;  %p2708_p1 = scmp.ge.s32.totalorder %s3126_s19, 1 }
   0x5   : > { %p193_p2 = scmp.lt.s32.totalorder %s3126_s19, 5 }
   0x6   : > { %s4480_s20 = smov (%p24_p0, %s23_s20), 0  ;;  %s4482_s21 = smov (!%p24_p0, %s26_s21), %s3122_s18 }
   0x7   : > { %p194_p3 = pnand %p2708_p1, %p193_p2  ;;  %p28_p4 = scmp.ge.s32.totalorder %s4482_s21, 2 }
   0x9   : > { %s4484_s21 = smov (%p28_p4, %s4482_s21), 0  ;;  %197 = sbr.rel (%p194_p3) target bundleno = 911 (0x38f), region = 36 }
   0xe   : > { %v288_v0 = vld [vmem:[%s4457_s2 + $0x20] sm:$0xf]  ;;  %vm338_vm0 = vcmask 1043456   ;;  %v287_v1 = vld [vmem:[%s4457_s2 + $0x18] sm:$0xff]  ;;  %p232_p5 = scmp.lt.s32.totalorder %s3114_s16, 1  ;;  %v286_v2 = vld [vmem:[%s4457_s2 + $0x10] sm:$0xff] }
   0xf   : > { %2965 = vmatpush.msk.msra.mxu1 %vm338_vm0, %v288_v0  ;;  %2966 = vmatpush.msk.msra.mxu2 %vm338_vm0, %v288_v0  ;;  %s2717_s28 = smul.u32 192, %s3110_s15  ;;  %v285_v3 = vld [vmem:[%s4457_s2 + $0x8] sm:$0xff]  ;;  %v284_v4 = vld [vmem:[%s4457_s2] sm:$0xff]  ;;  %vm289_vm1 = vcmask 293888   ;;  %v2761_v7 = vld [vmem:[%s4457_s2 + $0x70] sm:$0xf] }
  0x10   : > { %2967 = vmatpush.msk.msra.mxu3 %vm338_vm0, %v288_v0  ;;  %s4486_s16 = smov (!%p232_p5, %s3114_s16), 1  ;;  %2718 = vmatpush.msk.msra.mxu0 %vm338_vm0, %v288_v0  ;;  %v2739_v9 = vld [vmem:[%s4457_s2 + $0x48] sm:$0xf]  ;;  %v2809_v10 = vld [vmem:[%s4457_s2 + $0x98] sm:$0xf]  ;;  %v2738_v12 = vld [vmem:[%s4457_s2 + $0x40] sm:$0xff] }
  0x11   : > { %2968 = vmatpush.msra.mxu1 %v287_v1  ;;  %2969 = vmatpush.msra.mxu2 %v287_v1  ;;  %s2980_s5 = smul.u32 432, %s4486_s16  ;;  %v2760_v11 = vld [vmem:[%s4457_s2 + $0x68] sm:$0xff]  ;;  %v2808_v13 = vld [vmem:[%s4457_s2 + $0x90] sm:$0xff]  ;;  %v2831_v15 = vld [vmem:[%s4457_s2 + $0xc0] sm:$0xf]  ;;  %vm431_vm2 = vcmask 1046528  }
  0x12   : > { %2970 = vmatpush.msra.mxu3 %v287_v1  ;;  %354 = vmatpush.msra.mxu0 %v287_v1  ;;  %v2759_v16 = vld [vmem:[%s4457_s2 + $0x60] sm:$0xff]  ;;  %v2807_v17 = vld [vmem:[%s4457_s2 + $0x88] sm:$0xff]  ;;  %v2737_v18 = vld [vmem:[%s4457_s2 + $0x38] sm:$0xff]  ;;  %vm626_vm3 = vcmask 1045504   ;;  %s2710_s27 = sshll.u32 %s3110_s15, 4  ;;  %s2711_s15 = sshll.u32 %s4486_s16, 5 }
  0x13   : > { %2971 = vmatpush.msra.mxu1 %v286_v2  ;;  %2972 = vmatpush.msra.mxu2 %v286_v2  ;;  %s236_s10 = scalar_lea.vmem %s4455_s0, %s2980_s5  ;;  %v2830_v21 = vld [vmem:[%s4457_s2 + $0xb8] sm:$0xff]  ;;  %v2736_v24 = vld [vmem:[%s4457_s2 + $0x30] sm:$0xff]  ;;  %v2806_v25 = vld [vmem:[%s4457_s2 + $0x80] sm:$0xff]  ;;  %p240_p6 = scmp.lt.s32.totalorder %s2710_s27, 31  ;;  %vm2558_vm5 = vcmask 261120   ;;  %vm2575_vm6 = vcmask 523264  }
  0x14   : > { %2973 = vmatpush.msra.mxu3 %v286_v2  ;;  %355 = vmatpush.msra.mxu0 %v286_v2  ;;  %s3213_s11 = scalar_lea.vmem %s236_s10, %s2717_s28  ;;  %v2758_v22 = vld [vmem:[%s4457_s2 + $0x58] sm:$0xff]  ;;  %v2829_v26 = vld [vmem:[%s4457_s2 + $0xb0] sm:$0xff]  ;;  %v2735_v28 = vld [vmem:[%s4457_s2 + $0x28] sm:$0xff]  ;;  %s3128_s6 = smov 32  }
  0x15   : > { %2974 = vmatpush.msra.mxu1 %v285_v3  ;;  %2975 = vmatpush.msra.mxu2 %v285_v3  ;;  %v3216_v5 = vld [vmem:[%s3213_s11 + $0x30] sm:$0xff]  ;;  %v3219_v6 = vld [vmem:[%s3213_s11 + $0x60] sm:$0xff]  ;;  %v3267_v19 = vld [vmem:[%s3213_s11 + $0x38] sm:$0xff]  ;;  %s4488_s27 = smov (!%p240_p6, %s2710_s27), 31  ;;  %s3129_s8 = smov 64  }
  0x16   : > { %2976 = vmatpush.msra.mxu3 %v285_v3  ;;  %356 = vmatpush.msra.mxu0 %v285_v3  ;;  %v3225_v8 = vld [vmem:[%s3213_s11 + $0x90] sm:$0xff]  ;;  %v3251_v14 = vld [vmem:[%s3213_s11] sm:$0xff]  ;;  %v3270_v20 = vld [vmem:[%s3213_s11 + $0x68] sm:$0xff]  ;;  %s3746_s28 = sadd.s32 %s2711_s15, %s4488_s27 }
  0x17   : > { %2977 = vmatpush.msra.mxu1 %v284_v4  ;;  %2978 = vmatpush.msra.mxu2 %v284_v4  ;;  %v3282_v23 = vld [vmem:[%s3213_s11 + $0x98] sm:$0xff]  ;;  %v2757_v27 = vld [vmem:[%s4457_s2 + $0x50] sm:$0xff]  ;;  %v3306_v29 = vld [vmem:[%s3213_s11 + $0x8] sm:$0xff]  ;;  %v432_v44 = vrot.slane %v3251_v14, 1  ;;  %v627_v45 = vrot.slane %v3251_v14, 2  ;;  %s2712_s29 = sshll.u32 %s3746_s28, 3 }
  0x18   : > { %2723 = vmatmul.msk.f32.vlgmr.msra.gmra.mxu1 %vm289_vm1, %v3216_v5  ;;  %2727 = vmatmul.msk.f32.vlgmr.msra.gmra.mxu2 %vm289_vm1, %v3219_v6  ;;  %v2805_v30 = vld [vmem:[%s4457_s2 + $0x78] sm:$0xff]  ;;  %v2828_v31 = vld [vmem:[%s4457_s2 + $0xa8] sm:$0xff]  ;;  %v2901_v32 = vld [vmem:[%s4457_s2 + $0x110] sm:$0xf]  ;;  %v433_v46 = vrot.slane %v3306_v29, 1  ;;  %v628_v47 = vrot.slane %v3306_v29, 2  ;;  %s3762_s5 = scalar_lea.vmem %s4456_s1, %s2712_s29  ;;  %s4372_s12 = scalar_lea.vmem %s4459_s4, %s2712_s29 }
  0x19   : > { %2762 = vmatpush.msk.msrb.mxu2 %vm338_vm0, %v2761_v7  ;;  %2979 = vmatpush.msra.mxu3 %v284_v4  ;;  %v2923_v33 = vld [vmem:[%s4457_s2 + $0x138] sm:$0xf]  ;;  %v2853_v34 = vld [vmem:[%s4457_s2 + $0xe8] sm:$0xf]  ;;  %v2827_v37 = vld [vmem:[%s4457_s2 + $0xa0] sm:$0xff]  ;;  %v442_v7 = vrot.slane %v3216_v5, 1 }
  0x1a   : > { %2731 = vmatmul.msk.f32.vlgmr.msra.gmra.mxu3 %vm289_vm1, %v3225_v8  ;;  %2740 = vmatpush.msk.msrb.mxu1 %vm338_vm0, %v2739_v9  ;;  %v3324_v35 = vld [vmem:[%s3213_s11 + $0x48] sm:$0xff]  ;;  %v3327_v36 = vld [vmem:[%s3213_s11 + $0x78] sm:$0xff]  ;;  %v2945_v39 = vld [vmem:[%s4457_s2 + $0x160] sm:$0xf]  ;;  %v434_v52 = vsel %vm431_vm2, %v432_v44, %v433_v46  ;;  %v629_v53 = vsel %vm626_vm3, %v627_v45, %v628_v47  ;;  %v3412_v9 = vrot.slane %v3267_v19, 1 }
  0x1b   : > { %2810 = vmatpush.msk.msrb.mxu3 %vm338_vm0, %v2809_v10  ;;  %720 = vmatpush.msrb.mxu2 %v2760_v11  ;;  %v3336_v38 = vld [vmem:[%s3213_s11 + $0xa8] sm:$0xff]  ;;  %v263_v40 = vld [vmem:[%s3213_s11 + $0x18] sm:$0xff]  ;;  %v3352_v41 = vld [vmem:[%s3213_s11 + $0x50] sm:$0xff]  ;;  %v642_v45 = vrot.slane %v3324_v35, 2 }
  0x1c   : > { %357 = vmatpush.msra.mxu0 %v284_v4  ;;  %525 = vmatpush.msrb.mxu1 %v2738_v12  ;;  %v3355_v42 = vld [vmem:[%s3213_s11 + $0x80] sm:$0xff]  ;;  %v3359_v43 = vld [vmem:[%s3213_s11 + $0xb0] sm:$0xff]  ;;  %v2900_v49 = vld [vmem:[%s4457_s2 + $0x108] sm:$0xff]  ;;  %v437_v54 = vrot.slane %v263_v40, 1  ;;  %v632_v1 = vrot.slane %v263_v40, 2 }
  0x1d   : > { %917 = vmatpush.msrb.mxu3 %v2808_v13  ;;  %2719 = vmatmul.msk.f32.vlgmr.msra.gmra.mxu0 %vm289_vm1, %v3251_v14  ;;  %v264_v48 = vld [vmem:[%s3213_s11 + $0x20] sm:$0xff]  ;;  %v2922_v50 = vld [vmem:[%s4457_s2 + $0x130] sm:$0xff]  ;;  %v2944_v60 = vld [vmem:[%s4457_s2 + $0x158] sm:$0xff]  ;;  %v3422_v13 = vsel %vm431_vm2, %v442_v7, %v3412_v9 }
  0x1e   : > { %2832 = vmatpush.msk.msrb.mxu0 %vm338_vm0, %v2831_v15  ;;  %721 = vmatpush.msrb.mxu2 %v2759_v16  ;;  %v2852_v51 = vld [vmem:[%s4457_s2 + $0xe0] sm:$0xff]  ;;  %v438_v55 = vrot.slane %v264_v48, 1  ;;  %v262_v56 = vld [vmem:[%s3213_s11 + $0x10] sm:$0x3]  ;;  %v3393_v61 = vld [vmem:[%s3213_s11 + $0x28] sm:$0x3] }
  0x1f   : > { %918 = vmatpush.msrb.mxu3 %v2807_v17  ;;  %526 = vmatpush.msrb.mxu1 %v2737_v18  ;;  %v435_v57 = vrot.slane %v262_v56, 1  ;;  %v630_v58 = vrot.slane %v262_v56, 2  ;;  %v1029_v0 = vrot.slane %v3393_v61, 1  ;;  %v3401_v2 = vrot.slane %v264_v48, 2  ;;  %v265_v10 = vld [vmem:[%s3213_s11 + $0x28] sm:$0x3] }
  0x20   : > { %2724 = vmatmul.msk.f32.gmra.mxu1 %vm289_vm1, %v3267_v19  ;;  %2728 = vmatmul.msk.f32.gmra.mxu2 %vm289_vm1, %v3270_v20  ;;  %v1028_v59 = vsel %vm431_vm2, %v437_v54, %v438_v55  ;;  %v440_v11 = vrot.slane %v265_v10, 1  ;;  %v635_v12 = vrot.slane %v265_v10, 2  ;;  %v2899_v14 = vld [vmem:[%s4457_s2 + $0x100] sm:$0xff]  ;;  %v2921_v15 = vld [vmem:[%s4457_s2 + $0x128] sm:$0xff]  ;;  %v2850_v54 = vld [vmem:[%s4457_s2 + $0xd0] sm:$0xff]  ;;  %v457_v10 = vrot.slane %v3327_v36, 1 }
  0x21   : > { %1119 = vmatpush.msrb.mxu0 %v2830_v21  ;;  %722 = vmatpush.msrb.mxu2 %v2758_v22  ;;  %v436_v62 = vsel %vm431_vm2, %v433_v46, %v435_v57  ;;  %v631_v63 = vsel %vm626_vm3, %v628_v47, %v630_v58  ;;  %v1030_v3 = vsel %vm431_vm2, %v438_v55, %v1029_v0  ;;  %v3431_v16 = vld [vmem:[%s3213_s11 + $0x40] sm:$0x3]  ;;  %v2851_v22 = vld [vmem:[%s4457_s2 + $0xd8] sm:$0xff]  ;;  %v3489_v46 = vrot.slane %v3352_v41, 2  ;;  %v2942_v58 = vld [vmem:[%s4457_s2 + $0x148] sm:$0xff] }
  0x22   : > { %2732 = vmatmul.msk.f32.gmra.mxu3 %vm289_vm1, %v3282_v23  ;;  %527 = vmatpush.msrb.mxu1 %v2736_v24  ;;  %v3407_v4 = vsel %vm626_vm3, %v632_v1, %v3401_v2  ;;  %v441_v17 = vsel %vm431_vm2, %v438_v55, %v440_v11  ;;  %v636_v18 = vsel %vm626_vm3, %v3401_v2, %v635_v12  ;;  %v1034_v21 = vrot.slane %v3431_v16, 1  ;;  %v274_v12 = vld [vmem:[%s3213_s11 + $0x70] sm:$0x3] }
  0x23   : > { %919 = vmatpush.msrb.mxu3 %v2806_v25  ;;  %1120 = vmatpush.msrb.mxu0 %v2829_v26  ;;  %v637_v24 = vrot.slane %v3216_v5, 2  ;;  %v3446_v25 = vrot.slane %v3267_v19, 2  ;;  %v647_v0 = vrot.slane %v3219_v6, 2  ;;  %v3541_v1 = vrot.slane %v3270_v20, 2 }
  0x24   : > { %723 = vmatpush.msrb.mxu2 %v2757_v27  ;;  %528 = vmatpush.msrb.mxu1 %v2735_v28  ;;  %v1035_v26 = vsel %vm431_vm2, %v3412_v9, %v1034_v21  ;;  %v2943_v27 = vld [vmem:[%s4457_s2 + $0x150] sm:$0xff]  ;;  %v3554_v11 = vrot.slane %v3355_v42, 1 }
  0x25   : > { %2720 = vmatmul.msk.f32.gmra.mxu0 %vm289_vm1, %v3306_v29  ;;  %920 = vmatpush.msrb.mxu3 %v2805_v30  ;;  %v3457_v28 = vsel %vm626_vm3, %v637_v24, %v3446_v25  ;;  %v447_v29 = vrot.slane %v3324_v35, 1  ;;  %v3462_v30 = vrot.slane %v3352_v41, 1  ;;  %v3549_v7 = vsel %vm626_vm3, %v647_v0, %v3541_v1  ;;  %v2897_v24 = vld [vmem:[%s4457_s2 + $0xf0] sm:$0xff] }
  0x26   : > { %1121 = vmatpush.msrb.mxu0 %v2828_v31  ;;  %2902 = vmatpush.msk.msra.mxu2 %vm338_vm0, %v2901_v32  ;;  %v268_v31 = vld [vmem:[%s3213_s11 + $0x40] sm:$0x3] }
  0x27   : > { %2924 = vmatpush.msk.msra.mxu3 %vm338_vm0, %v2923_v33  ;;  %2854 = vmatpush.msk.msra.mxu1 %vm338_vm0, %v2853_v34  ;;  %v445_v32 = vrot.slane %v268_v31, 1  ;;  %v640_v33 = vrot.slane %v268_v31, 2  ;;  %v3473_v34 = vsel %vm431_vm2, %v447_v29, %v3462_v30  ;;  %v652_v29 = vrot.slane %v3327_v36, 2 }
  0x28   : > { %2725 = vmatmul.msk.f32.gmra.mxu1 %vm289_vm1, %v3324_v35  ;;  %2729 = vmatmul.msk.f32.gmra.mxu2 %vm289_vm1, %v3327_v36  ;;  %v3587_v31 = vrot.slane %v3355_v42, 2 }
  0x29   : > { %1122 = vmatpush.msrb.mxu0 %v2827_v37  ;;  %1510 = vmatpush.msra.mxu2 %v2900_v49  ;;  %v3476_v37 = vld [vmem:[%s3213_s11 + $0x58] sm:$0x3]  ;;  %v2920_v49 = vld [vmem:[%s4457_s2 + $0x120] sm:$0xff] }
  0x2a   : > { %2733 = vmatmul.msk.f32.gmra.mxu3 %vm289_vm1, %v3336_v38  ;;  %1313 = vmatpush.msra.mxu1 %v2852_v51  ;;  %v1039_v44 = vrot.slane %v3476_v37, 1  ;;  %v452_v51 = vrot.slane %v3219_v6, 1 }
  0x2b   : > { %2946 = vmatpush.msk.msra.mxu0 %vm338_vm0, %v2945_v39  ;;  %1712 = vmatpush.msra.mxu3 %v2922_v50  ;;  %v446_v39 = vsel %vm431_vm2, %v3412_v9, %v445_v32  ;;  %v3503_v50 = vsel %vm626_vm3, %v642_v45, %v3489_v46  ;;  %v277_v45 = vld [vmem:[%s3213_s11 + $0x88] sm:$0x3] }
  0x2c   : > { %1511 = vmatpush.msra.mxu2 %v2899_v14  ;;  %1314 = vmatpush.msra.mxu1 %v2851_v22  ;;  %v1040_v47 = vsel %vm431_vm2, %v3462_v30, %v1039_v44  ;;  %v455_v14 = vrot.slane %v274_v12, 1  ;;  %v3603_v44 = vrot.slane %v3282_v23, 1 }
  0x2d   : > { %2721 = vmatmul.msk.f32.gmra.mxu0 %vm289_vm1, %v263_v40  ;;  %1713 = vmatpush.msra.mxu3 %v2921_v15  ;;  %v650_v15 = vrot.slane %v274_v12, 2 }
  0x2e   : > { %1906 = vmatpush.msra.mxu0 %v2944_v60  ;;  %1315 = vmatpush.msra.mxu1 %v2850_v54 }
  0x2f   : > { %1714 = vmatpush.msra.mxu3 %v2920_v49  ;;  %v651_v22 = vsel %vm626_vm3, %v3541_v1, %v650_v15  ;;  %v655_v49 = vrot.slane %v277_v45, 2 }
  0x30   : > { %2726 = vmatmul.msk.f32.gmra.mxu1 %vm289_vm1, %v3352_v41  ;;  %2730 = vmatmul.msk.f32.gmra.mxu2 %vm289_vm1, %v3355_v42 }
  0x31   : > { %1907 = vmatpush.msra.mxu0 %v2943_v27  ;;  %v2919_v27 = vld [vmem:[%s4457_s2 + $0x118] sm:$0xff] }
  0x32   : > { %2734 = vmatmul.msk.f32.gmra.mxu3 %vm289_vm1, %v3359_v43 }
  0x33   : > { %1908 = vmatpush.msra.mxu0 %v2942_v58  ;;  %1715 = vmatpush.msra.mxu3 %v2919_v27  ;;  %v657_v58 = vrot.slane %v3225_v8, 2 }
  0x35   : > { %2722 = vmatmul.msk.f32.gmra.mxu0 %vm289_vm1, %v264_v48 }
  0x38   : > { %2741 = vmatmul.msk.f32.vlgmr.msrb.gmra.mxu1 %vm289_vm1, %v434_v52  ;;  %2763 = vmatmul.msk.f32.vlgmr.msrb.gmra.mxu2 %vm289_vm1, %v629_v53  ;;  %v3508_v52 = vrot.slane %v3270_v20, 1  ;;  %v271_v53 = vld [vmem:[%s3213_s11 + $0x58] sm:$0x3] }
  0x39   : > { %v450_v55 = vrot.slane %v271_v53, 1  ;;  %v645_v56 = vrot.slane %v271_v53, 2  ;;  %v3618_v53 = vld [vmem:[%s3213_s11 + $0xa0] sm:$0x3] }
  0x3a   : > { %2811 = vmatmul.msk.f32.vlgmr.msrb.gmra.mxu3 %vm289_vm1, %v263_v40  ;;  %v641_v40 = vsel %vm626_vm3, %v3446_v25, %v640_v33  ;;  %v3522_v57 = vsel %vm431_vm2, %v452_v51, %v3508_v52  ;;  %v456_v21 = vsel %vm431_vm2, %v3508_v52, %v455_v14  ;;  %v2849_v33 = vld [vmem:[%s4457_s2 + $0xc8] sm:$0xff] }
  0x3b   : > { %v451_v60 = vsel %vm431_vm2, %v3462_v30, %v450_v55  ;;  %1316 = vmatpush.msra.mxu1 %v2849_v33  ;;  %v656_v55 = vsel %vm626_vm3, %v3587_v31, %v655_v49 }
  0x3d   : > { %2833 = vmatmul.msk.f32.vlgmr.msrb.gmra.mxu0 %vm289_vm1, %v1028_v59 }
  0x40   : > { %2742 = vmatmul.msk.f32.gmra.mxu1 %vm289_vm1, %v436_v62  ;;  %2764 = vmatmul.msk.f32.gmra.mxu2 %vm289_vm1, %v631_v63  ;;  %v646_v62 = vsel %vm626_vm3, %v3489_v46, %v645_v56  ;;  %v1054_v56 = vrot.slane %v3618_v53, 1 }
  0x42   : > { %2812 = vmatmul.msk.f32.gmra.mxu3 %vm289_vm1, %v264_v48  ;;  %v2898_v48 = vld [vmem:[%s4457_s2 + $0xf8] sm:$0xff] }
  0x43   : > { %1512 = vmatpush.msra.mxu2 %v2898_v48  ;;  %v460_v48 = vrot.slane %v277_v45, 1  ;;  %v3674_v45 = vrot.slane %v3359_v43, 2 }
  0x45   : > { %2834 = vmatmul.msk.f32.gmra.mxu0 %vm289_vm1, %v1030_v3  ;;  %1513 = vmatpush.msra.mxu2 %v2897_v24  ;;  %v461_v54 = vsel %vm431_vm2, %v3554_v11, %v460_v48  ;;  %v3658_v24 = vld [vmem:[%s3213_s11 + $0xb8] sm:$0x3] }
  0x46   : > { %v1059_v33 = vrot.slane %v3658_v24, 1 }
  0x48   : > { %2743 = vmatmul.msk.f32.gmra.mxu1 %vm289_vm1, %v1028_v59  ;;  %2765 = vmatmul.msk.f32.gmra.mxu2 %vm289_vm1, %v3407_v4  ;;  %v3528_v59 = vld [vmem:[%s3213_s11 + $0x70] sm:$0x3] }
  0x49   : > { %v1044_v63 = vrot.slane %v3528_v59, 1 }
  0x4a   : > { %2813 = vmatmul.msk.f32.gmra.mxu3 %vm289_vm1, %v3216_v5 }
  0x4b   : > { %v1045_v3 = vsel %vm431_vm2, %v3508_v52, %v1044_v63 }
  0x4d   : > { %2835 = vmatmul.msk.f32.gmra.mxu0 %vm289_vm1, %v3422_v13 }
  0x50   : > { %2744 = vmatmul.msk.f32.gmra.mxu1 %vm289_vm1, %v441_v17  ;;  %2766 = vmatmul.msk.f32.gmra.mxu2 %vm289_vm1, %v636_v18  ;;  %v3565_v17 = vsel %vm431_vm2, %v457_v10, %v3554_v11  ;;  %v3568_v18 = vld [vmem:[%s3213_s11 + $0x88] sm:$0x3]  ;;  %v280_v10 = vld [vmem:[%s3213_s11 + $0xa0] sm:$0x3] }
  0x51   : > { %v465_v12 = vrot.slane %v280_v10, 1  ;;  %v660_v14 = vrot.slane %v280_v10, 2 }
  0x52   : > { %2814 = vmatmul.msk.f32.gmra.mxu3 %vm289_vm1, %v3267_v19 }
  0x55   : > { %2836 = vmatmul.msk.f32.gmra.mxu0 %vm289_vm1, %v1035_v26  ;;  %v1049_v26 = vrot.slane %v3568_v18, 1 }
  0x57   : > { %v1050_v32 = vsel %vm431_vm2, %v3554_v11, %v1049_v26 }
  0x58   : > { %2745 = vmatmul.msk.f32.gmra.mxu1 %vm289_vm1, %v3422_v13  ;;  %2767 = vmatmul.msk.f32.gmra.mxu2 %vm289_vm1, %v3457_v28 }
  0x5a   : > { %2815 = vmatmul.msk.f32.gmra.mxu3 %vm289_vm1, %v3324_v35 }
  0x5d   : > { %2837 = vmatmul.msk.f32.gmra.mxu0 %vm289_vm1, %v3473_v34 }
  0x60   : > { %2746 = vmatmul.msk.f32.gmra.mxu1 %vm289_vm1, %v446_v39  ;;  %2768 = vmatmul.msk.f32.gmra.mxu2 %vm289_vm1, %v641_v40  ;;  %v3598_v39 = vsel %vm626_vm3, %v652_v29, %v3587_v31  ;;  %v462_v40 = vrot.slane %v3225_v8, 1  ;;  %v466_v29 = vsel %vm431_vm2, %v3603_v44, %v465_v12 }
  0x62   : > { %2816 = vmatmul.msk.f32.gmra.mxu3 %vm289_vm1, %v3352_v41  ;;  %v1053_v51 = vsel %vm431_vm2, %v462_v40, %v3603_v44  ;;  %v662_v40 = vrot.slane %v3336_v38, 2 }
  0x65   : > { %2838 = vmatmul.msk.f32.gmra.mxu0 %vm289_vm1, %v1040_v47  ;;  %v2941_v47 = vld [vmem:[%s4457_s2 + $0x140] sm:$0xff] }
  0x66   : > { %1909 = vmatpush.msra.mxu0 %v2941_v47 }
  0x68   : > { %2747 = vmatmul.msk.f32.gmra.mxu1 %vm289_vm1, %v3473_v34  ;;  %2769 = vmatmul.msk.f32.gmra.mxu2 %vm289_vm1, %v3503_v50 }
  0x6a   : > { %2817 = vmatmul.msk.f32.gmra.mxu3 %vm289_vm1, %v3219_v6 }
  0x6d   : > { %2839 = vmatmul.msk.f32.gmra.mxu0 %vm289_vm1, %v3522_v57 }
  0x70   : > { %2748 = vmatmul.msk.f32.gmra.mxu1 %vm289_vm1, %v451_v60  ;;  %2770 = vmatmul.msk.f32.gmra.mxu2 %vm289_vm1, %v646_v62  ;;  %v3630_v60 = vrot.slane %v3282_v23, 2  ;;  %v1055_v62 = vsel %vm431_vm2, %v3603_v44, %v1054_v56  ;;  %v3696_v56 = vld [vmem:[%s3213_s11 + $0xc0] sm:$0xff] }
  0x72   : > { %2818 = vmatmul.msk.f32.gmra.mxu3 %vm289_vm1, %v3270_v20  ;;  %v3640_v0 = vsel %vm626_vm3, %v657_v58, %v3630_v60  ;;  %v1061_v58 = vrot.slane %v3696_v56, 1 }
  0x75   : > { %2840 = vmatmul.msk.f32.gmra.mxu0 %vm289_vm1, %v1045_v3  ;;  %v3645_v3 = vrot.slane %v3359_v43, 1 }
  0x77   : > { %v1060_v48 = vsel %vm431_vm2, %v3645_v3, %v1059_v33  ;;  %v3718_v33 = vld [vmem:[%s3213_s11 + $0xd0] sm:$0x3] }
  0x78   : > { %2749 = vmatmul.msk.f32.gmra.mxu1 %vm289_vm1, %v3522_v57  ;;  %2771 = vmatmul.msk.f32.gmra.mxu2 %vm289_vm1, %v3549_v7  ;;  %4466 = vst [vmem:[#allocation6_spill] sm:$0xff] %v3718_v33 }
  0x7a   : > { %2819 = vmatmul.msk.f32.gmra.mxu3 %vm289_vm1, %v3327_v36 }
  0x7d   : > { %2841 = vmatmul.msk.f32.gmra.mxu0 %vm289_vm1, %v3565_v17 }
  0x80   : > { %2750 = vmatmul.msk.f32.gmra.mxu1 %vm289_vm1, %v456_v21  ;;  %2772 = vmatmul.msk.f32.gmra.mxu2 %vm289_vm1, %v651_v22 }
  0x82   : > { %2820 = vmatmul.msk.f32.gmra.mxu3 %vm289_vm1, %v3355_v42 }
  0x85   : > { %2842 = vmatmul.msk.f32.gmra.mxu0 %vm289_vm1, %v1050_v32  ;;  %v661_v32 = vsel %vm626_vm3, %v3630_v60, %v660_v14 }
  0x88   : > { %2751 = vmatmul.msk.f32.gmra.mxu1 %vm289_vm1, %v3565_v17  ;;  %2773 = vmatmul.msk.f32.gmra.mxu2 %vm289_vm1, %v3598_v39 }
  0x8a   : > { %2821 = vmatmul.msk.f32.gmra.mxu3 %vm289_vm1, %v3225_v8  ;;  %v467_v8 = vrot.slane %v3336_v38, 1 }
  0x8c   : > { %v1058_v21 = vsel %vm431_vm2, %v467_v8, %v3645_v3 }
  0x8d   : > { %2843 = vmatmul.msk.f32.gmra.mxu0 %vm289_vm1, %v1053_v51 }
  0x90   : > { %2752 = vmatmul.msk.f32.gmra.mxu1 %vm289_vm1, %v461_v54  ;;  %2774 = vmatmul.msk.f32.gmra.mxu2 %vm289_vm1, %v656_v55 }
  0x92   : > { %2822 = vmatmul.msk.f32.gmra.mxu3 %vm289_vm1, %v3282_v23 }
  0x95   : > { %v3636_v63 = vpop.f32.mrf.mxu1  ;;  %2844 = vmatmul.msk.f32.gmra.mxu0 %vm289_vm1, %v1055_v62  ;;  %v283_v62 = vld [vmem:[%s3213_s11 + $0xb8] sm:$0x3] }
  0x96   : > { %v470_v10 = vrot.slane %v283_v62, 1  ;;  %v665_v12 = vrot.slane %v283_v62, 2 }
  0x98   : > { %2753 = vmatmul.msk.f32.gmra.mxu1 %vm289_vm1, %v1053_v51  ;;  %2775 = vmatmul.msk.f32.gmra.mxu2 %vm289_vm1, %v3640_v0  ;;  %v3685_v51 = vld [vmem:[%s3213_s11 + $0xc8] sm:$0xff]  ;;  %v666_v62 = vsel %vm626_vm3, %v3674_v45, %v665_v12 }
  0x99   : > { %v3702_v8 = vrot.slane %v3685_v51, 1 }
  0x9a   : > { %2823 = vmatmul.msk.f32.gmra.mxu3 %vm289_vm1, %v3336_v38  ;;  %v359_v15 = vpop.f32.mrf.mxu0  ;;  %v3693_v38 = vsel %vm626_vm3, %v662_v40, %v3674_v45 }
  0x9b   : > { %v3655_v22 = vpop.f32.mrf.mxu2  ;;  %4464 = vst [vmem:[#allocation4_spill] sm:$0xff] %v3702_v8 }
  0x9d   : > { %v3660_v26 = vpop.f32.mrf.mxu1  ;;  %v3662_v27 = vpop.f32.mrf.mxu3  ;;  %2845 = vmatmul.msk.f32.gmra.mxu0 %vm289_vm1, %v1058_v21 }
  0xa0   : > { %2754 = vmatmul.msk.f32.gmra.mxu1 %vm289_vm1, %v466_v29  ;;  %2776 = vmatmul.msk.f32.gmra.mxu2 %vm289_vm1, %v661_v32  ;;  %v3713_v29 = vsel %vm431_vm2, %v1061_v58, %v3702_v8  ;;  %v1064_v58 = vrot.slane %v3718_v33, 1 }
  0xa1   : > { %4465 = vst [vmem:[#allocation5_spill] sm:$0xff] %v3713_v29 }
  0xa2   : > { %2824 = vmatmul.msk.f32.gmra.mxu3 %vm289_vm1, %v3359_v43  ;;  %v3678_v47 = vpop.f32.mrf.mxu0 }
  0xa3   : > { %v3682_v49 = vpop.f32.mrf.mxu2 }
  0xa5   : > { %v3687_v54 = vpop.f32.mrf.mxu1  ;;  %v3689_v55 = vpop.f32.mrf.mxu3  ;;  %2846 = vmatmul.msk.f32.gmra.mxu0 %vm289_vm1, %v1060_v48  ;;  %v471_v48 = vsel %vm431_vm2, %v3645_v3, %v470_v10  ;;  %v1065_v10 = vsel %vm431_vm2, %v3702_v8, %v1064_v58 }
  0xa6   : > { %4463 = vst [vmem:[#allocation3_spill] sm:$0xff] %v3689_v55 }
  0xa8   : > { %2755 = vmatmul.msk.f32.gmra.mxu1 %vm289_vm1, %v1058_v21  ;;  %2777 = vmatmul.msk.f32.gmra.mxu2 %vm289_vm1, %v3693_v38 }
  0xaa   : > { %2825 = vmatmul.msk.f32.gmra.mxu3 %vm289_vm1, %v3696_v56  ;;  %v3709_v14 = vpop.f32.mrf.mxu0 }
  0xab   : > { %v3715_v32 = vpop.f32.mrf.mxu2 }
  0xad   : > { %v3721_v21 = vpop.f32.mrf.mxu1  ;;  %v3723_v40 = vpop.f32.mrf.mxu3  ;;  %2847 = vmatmul.msk.f32.gmra.mxu0 %vm289_vm1, %v3713_v29 }
  0xae   : > { %4467 = vst [vmem:[#allocation7_spill] sm:$0xff] %v3723_v40 }
  0xb0   : > { %2756 = vmatmul.msk.f32.gmra.mxu1 %vm289_vm1, %v471_v48  ;;  %2778 = vmatmul.msk.f32.gmra.mxu2 %vm289_vm1, %v666_v62  ;;  %v2875_v48 = vld [vmem:[%s3213_s11 + $0x40] sm:$0x3]  ;;  %v1223_v62 = vrot.slane %v3393_v61, 2 }
  0xb1   : > { %v1622_v8 = vrot.slane %v2875_v48, 1 }
  0xb2   : > { %2826 = vmatmul.msk.f32.gmra.mxu3 %vm289_vm1, %v3685_v51  ;;  %v3736_v40 = vpop.f32.mrf.mxu0  ;;  %v1224_v61 = vsel %vm626_vm3, %v3401_v2, %v1223_v62 }
  0xb3   : > { %v3740_v12 = vpop.f32.mrf.mxu2 }
  0xb5   : > { %v3743_v55 = vpop.f32.mrf.mxu3  ;;  %v530_v33 = vpop.f32.mrf.mxu1  ;;  %2848 = vmatmul.msk.f32.gmra.mxu0 %vm289_vm1, %v1065_v10 }
  0xb6   : > { %4468 = vst [vmem:[#allocation8_spill] sm:$0xff] %v3743_v55  ;;  %v594_v58 = vadd.f32 %v530_v33, %v359_v15  ;;  %v1816_v15 = vrot.slane %v2875_v48, 2  ;;  %v1623_v33 = vsel %vm431_vm2, %v3412_v9, %v1622_v8 }
  0xb8   : > { %2855 = vmatmul.msk.f32.vlgmr.msra.gmra.mxu1 %vm289_vm1, %v3407_v4  ;;  %2903 = vmatmul.msk.f32.vlgmr.msra.gmra.mxu2 %vm289_vm1, %v3216_v5  ;;  %v1817_v9 = vsel %vm626_vm3, %v3446_v25, %v1816_v15 }
  0xba   : > { %2925 = vmatmul.msk.f32.vlgmr.msra.gmra.mxu3 %vm289_vm1, %v3422_v13  ;;  %v1124_v55 = vpop.f32.mrf.mxu0 }
  0xbb   : > { %v725_v10 = vpop.f32.mrf.mxu2 }
  0xbc   : > { %v789_v29 = vadd.f32 %v725_v10, %v594_v58  ;;  %v2142_v58 = vld [vmem:[%s3762_s5] sm:$0xff] }
  0xbd   : > { %v533_v5 = vpop.f32.mrf.mxu1  ;;  %v922_v4 = vpop.f32.mrf.mxu3  ;;  %2947 = vmatmul.msk.f32.vlgmr.msra.gmra.mxu0 %vm289_vm1, %v3457_v28  ;;  %2174 = vrot.lane.b32.xlu0 %v2142_v58, %s3128_s6 }
  0xbe   : > { %v986_v13 = vadd.f32 %v922_v4, %v789_v29  ;;  %v595_v2 = vadd.f32 %v533_v5, %v3678_v47  ;;  %v2878_v47 = vld [vmem:[%s3213_s11 + $0x58] sm:$0x3]  ;;  %v1228_v5 = vrot.slane %v3431_v16, 2 }
  0xbf   : > { %v1627_v58 = vrot.slane %v2878_v47, 1 }
  0xc0   : > { %v3771_v10 = vadd.f32 %v1124_v55, %v986_v13  ;;  %2856 = vmatmul.msk.f32.gmra.mxu1 %vm289_vm1, %v1224_v61  ;;  %2904 = vmatmul.msk.f32.gmra.mxu2 %vm289_vm1, %v3267_v19  ;;  %v2143_v19 = vld [vmem:[%s3762_s5 + $0x8] sm:$0xff] }
  0xc2   : > { %2926 = vmatmul.msk.f32.gmra.mxu3 %vm289_vm1, %v1623_v33  ;;  %v1127_v29 = vpop.f32.mrf.mxu0 }
  0xc3   : > { %v728_v8 = vpop.f32.mrf.mxu2 }
  0xc4   : > { %v790_v55 = vadd.f32 %v728_v8, %v595_v2  ;;  %v2144_v8 = vld [vmem:[%s3762_s5 + $0x10] sm:$0xff] }
  0xc5   : > { %v536_v48 = vpop.f32.mrf.mxu1  ;;  %v925_v62 = vpop.f32.mrf.mxu3  ;;  %2948 = vmatmul.msk.f32.gmra.mxu0 %vm289_vm1, %v1817_v9  ;;  %2176 = vrot.lane.b32.xlu0 %v2143_v19, %s3128_s6  ;;  %v1821_v9 = vrot.slane %v2878_v47, 2 }
  0xc6   : > { %v987_v4 = vadd.f32 %v925_v62, %v790_v55  ;;  %v596_v13 = vadd.f32 %v536_v48, %v3709_v14  ;;  %v1628_v14 = vsel %vm431_vm2, %v3462_v30, %v1627_v58  ;;  %2178 = vrot.lane.b32.xlu1 %v2144_v8, %s3128_s6 }
  0xc7   : > { %v1822_v30 = vsel %vm626_vm3, %v3489_v46, %v1821_v9 }
  0xc8   : > { %v3783_v61 = vadd.f32 %v1127_v29, %v987_v4  ;;  %2857 = vmatmul.msk.f32.gmra.mxu1 %vm289_vm1, %v3457_v28  ;;  %2905 = vmatmul.msk.f32.gmra.mxu2 %vm289_vm1, %v3324_v35  ;;  %v1229_v35 = vsel %vm626_vm3, %v3446_v25, %v1228_v5  ;;  %v2145_v5 = vld [vmem:[%s3762_s5 + $0x18] sm:$0xff] }
  0xca   : > { %2927 = vmatmul.msk.f32.gmra.mxu3 %vm289_vm1, %v3473_v34  ;;  %v1130_v15 = vpop.f32.mrf.mxu0 }
  0xcb   : > { %v731_v33 = vpop.f32.mrf.mxu2 }
  0xcc   : > { %v791_v2 = vadd.f32 %v731_v33, %v596_v13  ;;  %v1233_v13 = vrot.slane %v3476_v37, 2 }
  0xcd   : > { %v539_v29 = vpop.f32.mrf.mxu1  ;;  %v928_v28 = vpop.f32.mrf.mxu3  ;;  %2949 = vmatmul.msk.f32.gmra.mxu0 %vm289_vm1, %v3503_v50 }
  0xce   : > { %v988_v16 = vadd.f32 %v928_v28, %v791_v2  ;;  %v597_v25 = vadd.f32 %v539_v29, %v3736_v40  ;;  %v2881_v40 = vld [vmem:[%s3213_s11 + $0x70] sm:$0x3]  ;;  %2180 = vrot.lane.b32.xlu1 %v2145_v5, %s3128_s6 }
  0xcf   : > { %v1632_v2 = vrot.slane %v2881_v40, 1  ;;  %v1826_v37 = vrot.slane %v2881_v40, 2 }
  0xd0   : > { %v3802_v34 = vadd.f32 %v1130_v15, %v988_v16  ;;  %2858 = vmatmul.msk.f32.gmra.mxu1 %vm289_vm1, %v1229_v35  ;;  %2906 = vmatmul.msk.f32.gmra.mxu2 %vm289_vm1, %v3352_v41 }
  0xd1   : > { %v1827_v9 = vsel %vm626_vm3, %v3541_v1, %v1826_v37  ;;  %v2149_v37 = vld [vmem:[%s3762_s5 + $0x38] sm:$0xff] }
  0xd2   : > { %2928 = vmatmul.msk.f32.gmra.mxu3 %vm289_vm1, %v1628_v14  ;;  %v1133_v55 = vpop.f32.mrf.mxu0 }
  0xd3   : > { %v734_v48 = vpop.f32.mrf.mxu2 }
  0xd4   : > { %v792_v62 = vadd.f32 %v734_v48, %v597_v25 }
  0xd5   : > { %v542_v4 = vpop.f32.mrf.mxu1  ;;  %v931_v19 = vpop.f32.mrf.mxu3  ;;  %2950 = vmatmul.msk.f32.gmra.mxu0 %vm289_vm1, %v1822_v30 }
  0xd6   : > { %v989_v47 = vadd.f32 %v931_v19, %v792_v62  ;;  %v598_v15 = vadd.f32 %v542_v4, %v3636_v63  ;;  %v1633_v63 = vsel %vm431_vm2, %v3508_v52, %v1632_v2  ;;  %2188 = vrot.lane.b32.xlu1 %v2149_v37, %s3128_s6 }
  0xd8   : > { %v3814_v41 = vadd.f32 %v1133_v55, %v989_v47  ;;  %2859 = vmatmul.msk.f32.gmra.mxu1 %vm289_vm1, %v3503_v50  ;;  %2907 = vmatmul.msk.f32.gmra.mxu2 %vm289_vm1, %v3219_v6  ;;  %v1234_v50 = vsel %vm626_vm3, %v3489_v46, %v1233_v13  ;;  %v2148_v13 = vld [vmem:[%s3762_s5 + $0x30] sm:$0xff] }
  0xd9   : > { %2186 = vrot.lane.b32.xlu0 %v2148_v13, %s3128_s6 }
  0xda   : > { %2929 = vmatmul.msk.f32.gmra.mxu3 %vm289_vm1, %v3522_v57  ;;  %v1136_v33 = vpop.f32.mrf.mxu0 }
  0xdb   : > { %v737_v58 = vpop.f32.mrf.mxu2 }
  0xdc   : > { %v793_v29 = vadd.f32 %v737_v58, %v598_v15  ;;  %v2885_v15 = vld [vmem:[%s3213_s11 + $0x90] sm:$0xff] }
  0xdd   : > { %v545_v28 = vpop.f32.mrf.mxu1  ;;  %v934_v35 = vpop.f32.mrf.mxu3  ;;  %2951 = vmatmul.msk.f32.gmra.mxu0 %vm289_vm1, %v3549_v7  ;;  %v1639_v2 = vrot.slane %v2885_v15, 1 }
  0xde   : > { %v990_v6 = vadd.f32 %v934_v35, %v793_v29  ;;  %v599_v57 = vadd.f32 %v545_v28, %v3660_v26  ;;  %v1238_v26 = vrot.slane %v3528_v59, 2 }
  0xe0   : > { %v3832_v16 = vadd.f32 %v1136_v33, %v990_v6  ;;  %2860 = vmatmul.msk.f32.gmra.mxu1 %vm289_vm1, %v1234_v50  ;;  %2908 = vmatmul.msk.f32.gmra.mxu2 %vm289_vm1, %v3270_v20  ;;  %v2884_v20 = vld [vmem:[%s3213_s11 + $0x88] sm:$0x3]  ;;  %v1833_v50 = vrot.slane %v2885_v15, 2  ;;  %v1641_v6 = vsel %vm431_vm2, %v1639_v2, %v3603_v44 }
  0xe1   : > { %v1637_v19 = vrot.slane %v2884_v20, 1  ;;  %v1831_v59 = vrot.slane %v2884_v20, 2 }
  0xe2   : > { %2930 = vmatmul.msk.f32.gmra.mxu3 %vm289_vm1, %v1633_v63  ;;  %v1139_v46 = vpop.f32.mrf.mxu0 }
  0xe3   : > { %v740_v14 = vpop.f32.mrf.mxu2 }
  0xe4   : > { %v794_v8 = vadd.f32 %v740_v14, %v599_v57  ;;  %v2887_v57 = vld [vmem:[%s3213_s11 + $0xa0] sm:$0x3] }
  0xe5   : > { %v548_v25 = vpop.f32.mrf.mxu1  ;;  %v937_v52 = vpop.f32.mrf.mxu3  ;;  %2952 = vmatmul.msk.f32.gmra.mxu0 %vm289_vm1, %v1827_v9 }
  0xe6   : > { %v991_v55 = vadd.f32 %v937_v52, %v794_v8  ;;  %v600_v48 = vadd.f32 %v548_v25, %v3687_v54  ;;  %v1638_v54 = vsel %vm431_vm2, %v3554_v11, %v1637_v19  ;;  %v1832_v11 = vsel %vm626_vm3, %v3587_v31, %v1831_v59  ;;  %v2888_v19 = vld [vmem:[%s3213_s11 + $0xa8] sm:$0xff] }
  0xe7   : > { %v1835_v8 = vsel %vm626_vm3, %v1833_v50, %v3630_v60  ;;  %v1642_v25 = vrot.slane %v2887_v57, 1 }
  0xe8   : > { %v3842_v30 = vadd.f32 %v1139_v46, %v991_v55  ;;  %2861 = vmatmul.msk.f32.gmra.mxu1 %vm289_vm1, %v3549_v7  ;;  %2909 = vmatmul.msk.f32.gmra.mxu2 %vm289_vm1, %v3327_v36  ;;  %v1239_v7 = vsel %vm626_vm3, %v3541_v1, %v1238_v26  ;;  %v1243_v46 = vrot.slane %v3568_v18, 2 }
  0xea   : > { %2931 = vmatmul.msk.f32.gmra.mxu3 %vm289_vm1, %v3565_v17  ;;  %v1142_v62 = vpop.f32.mrf.mxu0  ;;  %v1244_v18 = vsel %vm626_vm3, %v3587_v31, %v1243_v46 }
  0xeb   : > { %v743_v4 = vpop.f32.mrf.mxu2 }
  0xec   : > { %v795_v47 = vadd.f32 %v743_v4, %v600_v48  ;;  %v1836_v48 = vrot.slane %v2887_v57, 2 }
  0xed   : > { %v551_v5 = vpop.f32.mrf.mxu1  ;;  %v940_v40 = vpop.f32.mrf.mxu3  ;;  %2953 = vmatmul.msk.f32.gmra.mxu0 %vm289_vm1, %v3598_v39 }
  0xee   : > { %v992_v36 = vadd.f32 %v940_v40, %v795_v47  ;;  %v601_v1 = vadd.f32 %v551_v5, %v3721_v21  ;;  %v2146_v21 = vld [vmem:[%s3762_s5 + $0x20] sm:$0xff]  ;;  %v1644_v40 = vrot.slane %v2888_v19, 1 }
  0xef   : > { %2182 = vrot.lane.b32.xlu2 %v2146_v21, %s3128_s6  ;;  %v2152_v21 = vld [vmem:[%s3762_s5 + $0x50] sm:$0xff] }
  0xf0   : > { %v3860_v17 = vadd.f32 %v1142_v62, %v992_v36  ;;  %2862 = vmatmul.msk.f32.gmra.mxu1 %vm289_vm1, %v1239_v7  ;;  %2910 = vmatmul.msk.f32.gmra.mxu2 %vm289_vm1, %v3355_v42  ;;  %v2147_v62 = vld [vmem:[%s3762_s5 + $0x28] sm:$0xff]  ;;  %v1646_v13 = vsel %vm431_vm2, %v1644_v40, %v3645_v3  ;;  %v2154_v40 = vld [vmem:[%s3762_s5 + $0x60] sm:$0xff] }
  0xf1   : > { %2194 = vrot.lane.b32.xlu1 %v2152_v21, %s3128_s6 }
  0xf2   : > { %2932 = vmatmul.msk.f32.gmra.mxu3 %vm289_vm1, %v1638_v54  ;;  %v1145_v33 = vpop.f32.mrf.mxu0  ;;  %v1838_v54 = vrot.slane %v2888_v19, 2 }
  0xf3   : > { %v746_v58 = vpop.f32.mrf.mxu2 }
  0xf4   : > { %v796_v29 = vadd.f32 %v746_v58, %v601_v1  ;;  %v2890_v1 = vld [vmem:[%s3213_s11 + $0xb8] sm:$0x3]  ;;  %v1840_v2 = vsel %vm626_vm3, %v1838_v54, %v3674_v45 }
  0xf5   : > { %v554_v28 = vpop.f32.mrf.mxu1  ;;  %v943_v35 = vpop.f32.mrf.mxu3  ;;  %2954 = vmatmul.msk.f32.gmra.mxu0 %vm289_vm1, %v1832_v11 }
  0xf6   : > { %v993_v42 = vadd.f32 %v943_v35, %v796_v29  ;;  %v602_v9 = vadd.f32 %v554_v28, %v3655_v22  ;;  %v1643_v22 = vsel %vm431_vm2, %v3603_v44, %v1642_v25  ;;  %v1837_v44 = vsel %vm626_vm3, %v3630_v60, %v1836_v48 }
  0xf7   : > { %2184 = vrot.lane.b32.xlu2 %v2147_v62, %s3128_s6  ;;  %v1647_v28 = vrot.slane %v2890_v1, 1 }
  0xf8   : > { %v3876_v63 = vadd.f32 %v1145_v33, %v993_v42  ;;  %2863 = vmatmul.msk.f32.gmra.mxu1 %vm289_vm1, %v3598_v39  ;;  %2911 = vmatmul.msk.f32.gmra.mxu2 %vm289_vm1, %v2885_v15  ;;  %v1248_v33 = vrot.slane %v3618_v53, 2 }
  0xfa   : > { %2933 = vmatmul.msk.f32.gmra.mxu3 %vm289_vm1, %v1641_v6  ;;  %v1148_v14 = vpop.f32.mrf.mxu0  ;;  %v1249_v50 = vsel %vm626_vm3, %v3630_v60, %v1248_v33  ;;  %v1841_v6 = vrot.slane %v2890_v1, 2 }
  0xfb   : > { %v749_v39 = vpop.f32.mrf.mxu2 }
  0xfc   : > { %v797_v52 = vadd.f32 %v749_v39, %v602_v9  ;;  %v1255_v39 = vrot.slane %v3696_v56, 2 }
  0xfd   : > { %v557_v55 = vpop.f32.mrf.mxu1  ;;  %v946_v20 = vpop.f32.mrf.mxu3  ;;  %2955 = vmatmul.msk.f32.gmra.mxu0 %vm289_vm1, %v1835_v8 }
  0xfe   : > { %v994_v26 = vadd.f32 %v946_v20, %v797_v52  ;;  %v603_v31 = vadd.f32 %v557_v55, %v3682_v49  ;;  %v2151_v49 = vld [vmem:[%s3762_s5 + $0x48] sm:$0xff]  ;;  %v2893_v55 = vld [vmem:[%s3213_s11 + $0xd0] sm:$0x3]  ;;  %v1253_v20 = vrot.slane %v3658_v24, 2 }
  0xff   : > { %2192 = vrot.lane.b32.xlu0 %v2151_v49, %s3128_s6  ;;  %v1652_v62 = vrot.slane %v2893_v55, 1 }
 0x100   : > { %v3895_v4 = vadd.f32 %v1148_v14, %v994_v26  ;;  %2864 = vmatmul.msk.f32.gmra.mxu1 %vm289_vm1, %v1244_v18  ;;  %2912 = vmatmul.msk.f32.gmra.mxu2 %vm289_vm1, %v3282_v23  ;;  %v4469_v26 = vld [vmem:[#allocation5_spill] sm:$0xff]  ;;  %v1254_v24 = vsel %vm626_vm3, %v3674_v45, %v1253_v20 }
 0x102   : > { %2934 = vmatmul.msk.f32.gmra.mxu3 %vm289_vm1, %v1643_v22  ;;  %v1151_v47 = vpop.f32.mrf.mxu0 }
 0x103   : > { %v752_v5 = vpop.f32.mrf.mxu2 }
 0x104   : > { %v798_v7 = vadd.f32 %v752_v5, %v603_v31 }
 0x105   : > { %v560_v36 = vpop.f32.mrf.mxu1  ;;  %v949_v59 = vpop.f32.mrf.mxu3  ;;  %2956 = vmatmul.msk.f32.gmra.mxu0 %vm289_vm1, %v1837_v44  ;;  %v4470_v44 = vld [vmem:[#allocation4_spill] sm:$0xff] }
 0x106   : > { %v995_v23 = vadd.f32 %v949_v59, %v798_v7  ;;  %v604_v11 = vadd.f32 %v560_v36, %v3715_v32  ;;  %v1648_v32 = vsel %vm431_vm2, %v3645_v3, %v1647_v28  ;;  %v1842_v3 = vsel %vm626_vm3, %v3674_v45, %v1841_v6  ;;  %v2894_v36 = vld [vmem:[%s3213_s11 + $0xd8] sm:$0xff]  ;;  %v2895_v59 = vld [vmem:[%s3213_s11 + $0xe0] sm:$0xff] }
 0x107   : > { %v1653_v5 = vsel %vm431_vm2, %v4470_v44, %v1652_v62  ;;  %2198 = vrot.lane.b32.xlu0 %v2154_v40, %s3128_s6  ;;  %v4471_v45 = vld [vmem:[#allocation3_spill] sm:$0xff]  ;;  %v1654_v1 = vrot.slane %v2894_v36, 1  ;;  %v1655_v33 = vrot.slane %v2895_v59, 1  ;;  %v1849_v28 = vrot.slane %v2895_v59, 2 }
 0x108   : > { %v3910_v15 = vadd.f32 %v1151_v47, %v995_v23  ;;  %2865 = vmatmul.msk.f32.gmra.mxu1 %vm289_vm1, %v3640_v0  ;;  %2913 = vmatmul.msk.f32.gmra.mxu2 %vm289_vm1, %v2888_v19  ;;  %v1846_v47 = vrot.slane %v2893_v55, 2 }
 0x10a   : > { %2935 = vmatmul.msk.f32.gmra.mxu3 %vm289_vm1, %v1646_v13  ;;  %v1154_v58 = vpop.f32.mrf.mxu0 }
 0x10b   : > { %v755_v29 = vpop.f32.mrf.mxu2 }
 0x10c   : > { %v799_v35 = vadd.f32 %v755_v29, %v604_v11  ;;  %v1848_v29 = vrot.slane %v2894_v36, 2 }
 0x10d   : > { %v563_v0 = vpop.f32.mrf.mxu1  ;;  %v952_v42 = vpop.f32.mrf.mxu3  ;;  %2957 = vmatmul.msk.f32.gmra.mxu0 %vm289_vm1, %v1840_v2 }
 0x10e   : > { %v996_v53 = vadd.f32 %v952_v42, %v799_v35  ;;  %v605_v60 = vadd.f32 %v563_v0, %v3740_v12  ;;  %v2150_v12 = vld [vmem:[%s3762_s5 + $0x40] sm:$0xff]  ;;  %v1656_v35 = vsel %vm431_vm2, %v1654_v1, %v1655_v33  ;;  %v2155_v0 = vld [vmem:[%s3762_s5 + $0x68] sm:$0xff] }
 0x10f   : > { %2190 = vrot.lane.b32.xlu2 %v2150_v12, %s3128_s6  ;;  %2200 = vrot.lane.b32.xlu1 %v2155_v0, %s3128_s6 }
 0x110   : > { %v3928_v37 = vadd.f32 %v1154_v58, %v996_v53  ;;  %2866 = vmatmul.msk.f32.gmra.mxu1 %vm289_vm1, %v1249_v50  ;;  %2914 = vmatmul.msk.f32.gmra.mxu2 %vm289_vm1, %v3359_v43  ;;  %v3941_v43 = vrot.slane %v3685_v51, 2  ;;  %v2896_v50 = vld [vmem:[%s3213_s11 + $0xe8] sm:$0x3]  ;;  %v4472_v53 = vld [vmem:[#allocation6_spill] sm:$0xff] }
 0x111   : > { %v1258_v6 = vrot.slane %v4472_v53, 2  ;;  %v1851_v55 = vrot.slane %v2896_v50, 2 }
 0x112   : > { %2936 = vmatmul.msk.f32.gmra.mxu3 %vm289_vm1, %v1648_v32  ;;  %v1157_v57 = vpop.f32.mrf.mxu0  ;;  %v1845_v22 = vsel %vm626_vm3, %v1255_v39, %v3941_v43  ;;  %v1847_v13 = vsel %vm626_vm3, %v3941_v43, %v1846_v47  ;;  %v4473_v32 = vld [vmem:[#allocation7_spill] sm:$0xff] }
 0x113   : > { %v758_v46 = vpop.f32.mrf.mxu2 }
 0x114   : > { %v800_v9 = vadd.f32 %v758_v46, %v605_v60 }
 0x115   : > { %v566_v14 = vpop.f32.mrf.mxu1  ;;  %v955_v8 = vpop.f32.mrf.mxu3  ;;  %2958 = vmatmul.msk.f32.gmra.mxu0 %vm289_vm1, %v1842_v3  ;;  %v2153_v3 = vld [vmem:[%s3762_s5 + $0x58] sm:$0xff] }
 0x116   : > { %v997_v25 = vadd.f32 %v955_v8, %v800_v9  ;;  %v606_v18 = vadd.f32 %v566_v14, %v3662_v27  ;;  %v1657_v9 = vrot.slane %v2896_v50, 1 }
 0x117   : > { %2196 = vrot.lane.b32.xlu2 %v2153_v3, %s3128_s6 }
 0x118   : > { %v3944_v52 = vadd.f32 %v1157_v57, %v997_v25  ;;  %2867 = vmatmul.msk.f32.gmra.mxu1 %vm289_vm1, %v3693_v38  ;;  %2915 = vmatmul.msk.f32.gmra.mxu2 %vm289_vm1, %v3696_v56  ;;  %v1850_v57 = vsel %vm626_vm3, %v1848_v29, %v1849_v28  ;;  %v1259_v25 = vsel %vm626_vm3, %v3941_v43, %v1258_v6 }
 0x119   : > { %v1658_v20 = vsel %vm431_vm2, %v1655_v33, %v1657_v9  ;;  %v1852_v43 = vsel %vm626_vm3, %v1849_v28, %v1851_v55 }
 0x11a   : > { %2937 = vmatmul.msk.f32.gmra.mxu3 %vm289_vm1, %v4469_v26  ;;  %v1160_v48 = vpop.f32.mrf.mxu0  ;;  %v4474_v26 = vld [vmem:[#allocation8_spill] sm:$0xff] }
 0x11b   : > { %v761_v38 = vpop.f32.mrf.mxu2 }
 0x11c   : > { %v801_v56 = vadd.f32 %v761_v38, %v606_v18  ;;  %v2156_v38 = vld [vmem:[%s3762_s5 + $0x70] sm:$0xff] }
 0x11d   : > { %v569_v19 = vpop.f32.mrf.mxu1  ;;  %v958_v31 = vpop.f32.mrf.mxu3  ;;  %2959 = vmatmul.msk.f32.gmra.mxu0 %vm289_vm1, %v1845_v22 }
 0x11e   : > { %v998_v27 = vadd.f32 %v958_v31, %v801_v56  ;;  %v607_v23 = vadd.f32 %v569_v19, %v4471_v45 }
 0x11f   : > { %2202 = vrot.lane.b32.xlu2 %v2156_v38, %s3128_s6 }
 0x120   : > { %v3964_v7 = vadd.f32 %v1160_v48, %v998_v27  ;;  %2868 = vmatmul.msk.f32.gmra.mxu1 %vm289_vm1, %v1254_v24  ;;  %2916 = vmatmul.msk.f32.gmra.mxu2 %vm289_vm1, %v3685_v51  ;;  %v2157_v27 = vld [vmem:[%s3762_s5 + $0x78] sm:$0xff] }
 0x121   : > { %2204 = vrot.lane.b32.xlu0 %v2157_v27, %s3128_s6 }
 0x122   : > { %2938 = vmatmul.msk.f32.gmra.mxu3 %vm289_vm1, %v1653_v5  ;;  %v1163_v54 = vpop.f32.mrf.mxu0 }
 0x123   : > { %v764_v49 = vpop.f32.mrf.mxu2 }
 0x124   : > { %v802_v11 = vadd.f32 %v764_v49, %v607_v23 }
 0x125   : > { %v572_v58 = vpop.f32.mrf.mxu1  ;;  %v961_v51 = vpop.f32.mrf.mxu3  ;;  %2960 = vmatmul.msk.f32.gmra.mxu0 %vm289_vm1, %v1847_v13  ;;  %v4013_v13 = vld [vmem:[%s4458_s3] ss:$0 sm:$0xff] }
 0x126   : > { %v999_v2 = vadd.f32 %v961_v51, %v802_v11  ;;  %v608_v21 = vadd.f32 %v572_v58, %v4473_v32 }
 0x128   : > { %v3979_v42 = vadd.f32 %v1163_v54, %v999_v2  ;;  %2869 = vmatmul.msk.f32.gmra.mxu1 %vm289_vm1, %v1845_v22  ;;  %2917 = vmatmul.msk.f32.gmra.mxu2 %vm289_vm1, %v2894_v36  ;;  %v2043_v36 = vlaneseq }
 0x12a   : > { %2939 = vmatmul.msk.f32.gmra.mxu3 %vm289_vm1, %v1656_v35  ;;  %v1166_v60 = vpop.f32.mrf.mxu0  ;;  %v4015_v49 = vand.u32 127, %v2043_v36 }
 0x12b   : > { %v767_v46 = vpop.f32.mrf.mxu2 }
 0x12c   : > { %v803_v14 = vadd.f32 %v767_v46, %v608_v21  ;;  %vm2045_vm4 = vcmp.lt.s32.totalorder %v4015_v49, 96 }
 0x12d   : > { %v575_v8 = vpop.f32.mrf.mxu1  ;;  %v964_v39 = vpop.f32.mrf.mxu3  ;;  %2961 = vmatmul.msk.f32.gmra.mxu0 %vm289_vm1, %v1850_v57 }
 0x12e   : > { %v1000_v12 = vadd.f32 %v964_v39, %v803_v14  ;;  %v609_v48 = vadd.f32 %v575_v8, %v4474_v26 }
 0x130   : > { %v3995_v18 = vadd.f32 %v1166_v60, %v1000_v12  ;;  %2870 = vmatmul.msk.f32.gmra.mxu1 %vm289_vm1, %v1259_v25  ;;  %2918 = vmatmul.msk.f32.gmra.mxu2 %vm289_vm1, %v2895_v59 }
 0x132   : > { %2940 = vmatmul.msk.f32.gmra.mxu3 %vm289_vm1, %v1658_v20  ;;  %v1169_v22 = vpop.f32.mrf.mxu0 }
 0x133   : > { %v770_v62 = vpop.f32.mrf.mxu2 }
 0x134   : > { %v804_v56 = vadd.f32 %v770_v62, %v609_v48 }
 0x135   : > { %v967_v19 = vpop.f32.mrf.mxu3  ;;  %v1318_v31 = vpop.f32.mrf.mxu1  ;;  %2962 = vmatmul.msk.f32.gmra.mxu0 %vm289_vm1, %v1852_v43 }
 0x136   : > { %v1001_v24 = vadd.f32 %v967_v19, %v804_v56  ;;  %v1382_v44 = vadd.f32 %v1318_v31, %v3771_v10 }
 0x138   : > { %v4006_v47 = vadd.f32 %v1169_v22, %v1001_v24 }
 0x13a   : > { %v1911_v5 = vpop.f32.mrf.mxu0 }
 0x13b   : > { %v1515_v40 = vpop.f32.mrf.mxu2 }
 0x13c   : > { %v1579_v59 = vadd.f32 %v1515_v40, %v1382_v44 }
 0x13d   : > { %v1321_v45 = vpop.f32.mrf.mxu1  ;;  %v1717_v23 = vpop.f32.mrf.mxu3 }
 0x13e   : > { %v1781_v54 = vadd.f32 %v1717_v23, %v1579_v59  ;;  %v1383_v33 = vadd.f32 %v1321_v45, %v3783_v61 }
 0x140   : > { %v1975_v1 = vadd.f32 %v1911_v5, %v1781_v54 }
 0x142   : > { %v2027_v11 = vadd.f32 %v4013_v13, %v1975_v1  ;;  %v1914_v10 = vpop.f32.mrf.mxu0 }
 0x143   : > { %v1518_v58 = vpop.f32.mrf.mxu2 }
 0x144   : > { %v2046_v51 = vmul.f32 0.5, %v2027_v11  ;;  %v1580_v2 = vadd.f32 %v1518_v58, %v1383_v33 }
 0x145   : > { %v1324_v29 = vpop.f32.mrf.mxu1  ;;  %v1720_v28 = vpop.f32.mrf.mxu3 }
 0x146   : > { %v2062_v35 = vsel %vm2045_vm4, %v2046_v51, %v2027_v11  ;;  %v1782_v0 = vadd.f32 %v1720_v28, %v1580_v2  ;;  %v1384_v53 = vadd.f32 %v1324_v29, %v3802_v34 }
 0x147   : > { %3024 = vtanh.f32 %v2062_v35 }
 0x148   : > { %v1976_v50 = vadd.f32 %v1914_v10, %v1782_v0 }
 0x14a   : > { %v2028_v61 = vadd.f32 %v4013_v13, %v1976_v50  ;;  %v1917_v6 = vpop.f32.mrf.mxu0 }
 0x14b   : > { %v1521_v32 = vpop.f32.mrf.mxu2 }
 0x14c   : > { %v2047_v21 = vmul.f32 0.5, %v2028_v61  ;;  %v1581_v60 = vadd.f32 %v1521_v32, %v1384_v53 }
 0x14d   : > { %v3025_v57 = vpop.eup %3024  ;;  %v1327_v3 = vpop.f32.mrf.mxu1 }
 0x14e   : > { %v1723_v46 = vpop.f32.mrf.mxu3  ;;  %v2063_v9 = vsel %vm2045_vm4, %v2047_v21, %v2028_v61  ;;  %v2094_v8 = vmul.f32 0.5, %v3025_v57  ;;  %v1385_v12 = vadd.f32 %v1327_v3, %v3814_v41 }
 0x14f   : > { %v1783_v14 = vadd.f32 %v1723_v46, %v1581_v60  ;;  %3026 = vtanh.f32 %v2063_v9 }
 0x150   : > { %v2110_v25 = vadd.f32 0.5, %v2094_v8 }
 0x151   : > { %v1977_v39 = vadd.f32 %v1917_v6, %v1783_v14 }
 0x152   : > { %v4030_v55 = vsel %vm2045_vm4, %v2110_v25, %v3025_v57  ;;  %v1920_v20 = vpop.f32.mrf.mxu0 }
 0x153   : > { %v2029_v34 = vadd.f32 %v4013_v13, %v1977_v39  ;;  %v1524_v26 = vpop.f32.mrf.mxu2  ;;  %2254 = vrot.lane.b32.xlu1 %v4030_v55, %s3128_s6 }
 0x154   : > { %v1582_v22 = vadd.f32 %v1524_v26, %v1385_v12 }
 0x155   : > { %v2048_v48 = vmul.f32 0.5, %v2029_v34  ;;  %v3027_v43 = vpop.eup %3026  ;;  %v1330_v38 = vpop.f32.mrf.mxu1 }
 0x156   : > { %v1726_v62 = vpop.f32.mrf.mxu3  ;;  %v2095_v19 = vmul.f32 0.5, %v3027_v43  ;;  %v1386_v27 = vadd.f32 %v1330_v38, %v3832_v16 }
 0x157   : > { %v2064_v56 = vsel %vm2045_vm4, %v2048_v48, %v2029_v34  ;;  %v1784_v41 = vadd.f32 %v1726_v62, %v1582_v22 }
 0x158   : > { %3028 = vtanh.f32 %v2064_v56  ;;  %v2111_v24 = vadd.f32 0.5, %v2095_v19 }
 0x159   : > { %v1978_v31 = vadd.f32 %v1920_v20, %v1784_v41 }
 0x15a   : > { %v4040_v5 = vsel %vm2045_vm4, %v2111_v24, %v3027_v43  ;;  %v1923_v40 = vpop.f32.mrf.mxu0 }
 0x15b   : > { %v2030_v44 = vadd.f32 %v4013_v13, %v1978_v31  ;;  %v1527_v36 = vpop.f32.mrf.mxu2  ;;  %2256 = vrot.lane.b32.xlu2 %v4040_v5, %s3128_s6 }
 0x15c   : > { %v1583_v45 = vadd.f32 %v1527_v36, %v1386_v27 }
 0x15d   : > { %v2049_v59 = vmul.f32 0.5, %v2030_v44  ;;  %v1333_v54 = vpop.f32.mrf.mxu1 }
 0x15e   : > { %v3029_v23 = vpop.eup %3028  ;;  %v1729_v1 = vpop.f32.mrf.mxu3  ;;  %v1387_v51 = vadd.f32 %v1333_v54, %v3842_v30 }
 0x15f   : > { %v2065_v33 = vsel %vm2045_vm4, %v2049_v59, %v2030_v44  ;;  %v1785_v16 = vadd.f32 %v1729_v1, %v1583_v45  ;;  %v2096_v11 = vmul.f32 0.5, %v3029_v23 }
 0x160   : > { %3030 = vtanh.f32 %v2065_v33 }
 0x161   : > { %v1979_v10 = vadd.f32 %v1923_v40, %v1785_v16  ;;  %v2112_v58 = vadd.f32 0.5, %v2096_v11 }
 0x162   : > { %v1926_v28 = vpop.f32.mrf.mxu0 }
 0x163   : > { %v2031_v2 = vadd.f32 %v4013_v13, %v1979_v10  ;;  %v4050_v29 = vsel %vm2045_vm4, %v2112_v58, %v3029_v23  ;;  %v1530_v35 = vpop.f32.mrf.mxu2 }
 0x164   : > { %2258 = vrot.lane.b32.xlu0 %v4050_v29, %s3128_s6  ;;  %v1584_v50 = vadd.f32 %v1530_v35, %v1387_v51 }
 0x165   : > { %v2050_v0 = vmul.f32 0.5, %v2031_v2  ;;  %v1336_v61 = vpop.f32.mrf.mxu1 }
 0x166   : > { %v3031_v53 = vpop.eup %3030  ;;  %v1732_v6 = vpop.f32.mrf.mxu3  ;;  %v1388_v3 = vadd.f32 %v1336_v61, %v3860_v17 }
 0x167   : > { %v2066_v32 = vsel %vm2045_vm4, %v2050_v0, %v2031_v2  ;;  %v1786_v30 = vadd.f32 %v1732_v6, %v1584_v50  ;;  %v2097_v21 = vmul.f32 0.5, %v3031_v53 }
 0x168   : > { %3032 = vtanh.f32 %v2066_v32 }
 0x169   : > { %v1980_v60 = vadd.f32 %v1926_v28, %v1786_v30  ;;  %v2113_v57 = vadd.f32 0.5, %v2097_v21 }
 0x16a   : > { %v1929_v14 = vpop.f32.mrf.mxu0 }
 0x16b   : > { %v2032_v46 = vadd.f32 %v4013_v13, %v1980_v60  ;;  %v4060_v9 = vsel %vm2045_vm4, %v2113_v57, %v3031_v53  ;;  %v1533_v8 = vpop.f32.mrf.mxu2 }
 0x16c   : > { %2260 = vrot.lane.b32.xlu1 %v4060_v9, %s3128_s6  ;;  %v1585_v25 = vadd.f32 %v1533_v8, %v1388_v3 }
 0x16d   : > { %v2051_v39 = vmul.f32 0.5, %v2032_v46  ;;  %v1339_v34 = vpop.f32.mrf.mxu1 }
 0x16e   : > { %v3033_v12 = vpop.eup %3032  ;;  %v1735_v20 = vpop.f32.mrf.mxu3  ;;  %v1389_v38 = vadd.f32 %v1339_v34, %v3876_v63 }
 0x16f   : > { %v2067_v26 = vsel %vm2045_vm4, %v2051_v39, %v2032_v46  ;;  %v1787_v17 = vadd.f32 %v1735_v20, %v1585_v25  ;;  %v2098_v48 = vmul.f32 0.5, %v3033_v12 }
 0x170   : > { %3034 = vtanh.f32 %v2067_v26 }
 0x171   : > { %v1981_v22 = vadd.f32 %v1929_v14, %v1787_v17  ;;  %v2114_v43 = vadd.f32 0.5, %v2098_v48 }
 0x172   : > { %v1932_v41 = vpop.f32.mrf.mxu0 }
 0x173   : > { %v2033_v62 = vadd.f32 %v4013_v13, %v1981_v22  ;;  %v4070_v56 = vsel %vm2045_vm4, %v2114_v43, %v3033_v12  ;;  %v1536_v19 = vpop.f32.mrf.mxu2 }
 0x174   : > { %2262 = vrot.lane.b32.xlu2 %v4070_v56, %s3128_s6  ;;  %v1586_v24 = vadd.f32 %v1536_v19, %v1389_v38 }
 0x175   : > { %v2052_v31 = vmul.f32 0.5, %v2033_v62  ;;  %v1342_v44 = vpop.f32.mrf.mxu1 }
 0x176   : > { %v3035_v27 = vpop.eup %3034  ;;  %v1738_v40 = vpop.f32.mrf.mxu3  ;;  %v1390_v54 = vadd.f32 %v1342_v44, %v3895_v4 }
 0x177   : > { %v2068_v36 = vsel %vm2045_vm4, %v2052_v31, %v2033_v62  ;;  %v1788_v63 = vadd.f32 %v1738_v40, %v1586_v24  ;;  %v2099_v59 = vmul.f32 0.5, %v3035_v27 }
 0x178   : > { %3036 = vtanh.f32 %v2068_v36 }
 0x179   : > { %v1982_v45 = vadd.f32 %v1932_v41, %v1788_v63  ;;  %v2115_v23 = vadd.f32 0.5, %v2099_v59 }
 0x17a   : > { %v1935_v16 = vpop.f32.mrf.mxu0 }
 0x17b   : > { %v2034_v1 = vadd.f32 %v4013_v13, %v1982_v45  ;;  %v4080_v33 = vsel %vm2045_vm4, %v2115_v23, %v3035_v27  ;;  %v1539_v11 = vpop.f32.mrf.mxu2 }
 0x17c   : > { %2264 = vrot.lane.b32.xlu0 %v4080_v33, %s3128_s6  ;;  %v1587_v58 = vadd.f32 %v1539_v11, %v1390_v54 }
 0x17d   : > { %v2053_v10 = vmul.f32 0.5, %v2034_v1  ;;  %v1345_v2 = vpop.f32.mrf.mxu1 }
 0x17e   : > { %v3037_v51 = vpop.eup %3036  ;;  %v1741_v28 = vpop.f32.mrf.mxu3  ;;  %v1391_v61 = vadd.f32 %v1345_v2, %v3910_v15 }
 0x17f   : > { %v2069_v35 = vsel %vm2045_vm4, %v2053_v10, %v2034_v1  ;;  %v1789_v4 = vadd.f32 %v1741_v28, %v1587_v58  ;;  %v2100_v0 = vmul.f32 0.5, %v3037_v51  ;;  %v4116_v58 = vpop.permute.xlu2 %2182  ;;  %v4118_v28 = vpop.permute.xlu1 %2178 }
 0x180   : > { %3038 = vtanh.f32 %v2069_v35 }
 0x181   : > { %v1983_v50 = vadd.f32 %v1935_v16, %v1789_v4  ;;  %v2116_v53 = vadd.f32 0.5, %v2100_v0 }
 0x182   : > { %v1938_v30 = vpop.f32.mrf.mxu0 }
 0x183   : > { %v2035_v6 = vadd.f32 %v4013_v13, %v1983_v50  ;;  %v4090_v32 = vsel %vm2045_vm4, %v2116_v53, %v3037_v51  ;;  %v1542_v21 = vpop.f32.mrf.mxu2 }
 0x184   : > { %2266 = vrot.lane.b32.xlu1 %v4090_v32, %s3128_s6  ;;  %v1588_v57 = vadd.f32 %v1542_v21, %v1391_v61 }
 0x185   : > { %v2054_v60 = vmul.f32 0.5, %v2035_v6  ;;  %v1348_v46 = vpop.f32.mrf.mxu1 }
 0x186   : > { %v3039_v3 = vpop.eup %3038  ;;  %v1744_v14 = vpop.f32.mrf.mxu3  ;;  %v1392_v34 = vadd.f32 %v1348_v46, %v3928_v37 }
 0x187   : > { %v2070_v8 = vsel %vm2045_vm4, %v2054_v60, %v2035_v6  ;;  %v1790_v15 = vadd.f32 %v1744_v14, %v1588_v57  ;;  %v2101_v39 = vmul.f32 0.5, %v3039_v3 }
 0x188   : > { %3040 = vtanh.f32 %v2070_v8  ;;  %v4130_v8 = vpop.permute.xlu0 %2174 }
 0x189   : > { %v1984_v25 = vadd.f32 %v1938_v30, %v1790_v15  ;;  %v2117_v12 = vadd.f32 0.5, %v2101_v39  ;;  %v4132_v15 = vpop.permute.xlu2 %2184 }
 0x18a   : > { %v1941_v17 = vpop.f32.mrf.mxu0 }
 0x18b   : > { %v2036_v20 = vadd.f32 %v4013_v13, %v1984_v25  ;;  %v4100_v26 = vsel %vm2045_vm4, %v2117_v12, %v3039_v3  ;;  %v1545_v48 = vpop.f32.mrf.mxu2 }
 0x18c   : > { %2268 = vrot.lane.b32.xlu2 %v4100_v26, %s3128_s6  ;;  %v1589_v43 = vadd.f32 %v1545_v48, %v1392_v34 }
 0x18d   : > { %v2055_v22 = vmul.f32 0.5, %v2036_v20  ;;  %v1351_v62 = vpop.f32.mrf.mxu1 }
 0x18e   : > { %v3041_v38 = vpop.eup %3040  ;;  %v1747_v41 = vpop.f32.mrf.mxu3  ;;  %v1393_v44 = vadd.f32 %v1351_v62, %v3944_v52 }
 0x18f   : > { %v2071_v19 = vsel %vm2045_vm4, %v2055_v22, %v2036_v20  ;;  %v1791_v37 = vadd.f32 %v1747_v41, %v1589_v43  ;;  %v2102_v31 = vmul.f32 0.5, %v3041_v38 }
 0x190   : > { %3042 = vtanh.f32 %v2071_v19 }
 0x191   : > { %v1985_v24 = vadd.f32 %v1941_v17, %v1791_v37  ;;  %v2118_v27 = vadd.f32 0.5, %v2102_v31  ;;  %v4142_v17 = vpop.permute.xlu1 %2180 }
 0x192   : > { %v1944_v63 = vpop.f32.mrf.mxu0 }
 0x193   : > { %v2037_v40 = vadd.f32 %v4013_v13, %v1985_v24  ;;  %v4110_v36 = vsel %vm2045_vm4, %v2118_v27, %v3041_v38  ;;  %v1548_v59 = vpop.f32.mrf.mxu2  ;;  %v4146_v24 = vpop.permute.xlu2 %2190 }
 0x194   : > { %2270 = vrot.lane.b32.xlu0 %v4110_v36, %s3128_s6  ;;  %v1590_v23 = vadd.f32 %v1548_v59, %v1393_v44 }
 0x195   : > { %v2056_v45 = vmul.f32 0.5, %v2037_v40  ;;  %v1354_v1 = vpop.f32.mrf.mxu1 }
 0x196   : > { %v3043_v54 = vpop.eup %3042  ;;  %v1750_v16 = vpop.f32.mrf.mxu3  ;;  %v1394_v35 = vadd.f32 %v1354_v1, %v3964_v7 }
 0x197   : > { %v2072_v11 = vsel %vm2045_vm4, %v2056_v45, %v2037_v40  ;;  %v1792_v52 = vadd.f32 %v1750_v16, %v1590_v23  ;;  %v2103_v10 = vmul.f32 0.5, %v3043_v54  ;;  %v4156_v45 = vpop.permute.xlu0 %2176 }
 0x198   : > { %3044 = vtanh.f32 %v2072_v11 }
 0x199   : > { %v1986_v51 = vadd.f32 %v1944_v63, %v1792_v52  ;;  %v2119_v2 = vadd.f32 0.5, %v2103_v10  ;;  %v4158_v23 = vpop.permute.xlu1 %2188 }
 0x19a   : > { %v1947_v50 = vpop.f32.mrf.mxu0 }
 0x19b   : > { %v2038_v4 = vadd.f32 %v4013_v13, %v1986_v51  ;;  %v4124_v0 = vsel %vm2045_vm4, %v2119_v2, %v3043_v54  ;;  %v1551_v53 = vpop.f32.mrf.mxu2 }
 0x19c   : > { %2272 = vrot.lane.b32.xlu1 %v4124_v0, %s3128_s6  ;;  %v1591_v6 = vadd.f32 %v1551_v53, %v1394_v35 }
 0x19d   : > { %v2057_v61 = vmul.f32 0.5, %v2038_v4  ;;  %v1357_v21 = vpop.f32.mrf.mxu1 }
 0x19e   : > { %v3045_v30 = vpop.eup %3044  ;;  %v1753_v60 = vpop.f32.mrf.mxu3  ;;  %v1395_v39 = vadd.f32 %v1357_v21, %v3979_v42 }
 0x19f   : > { %v2073_v57 = vsel %vm2045_vm4, %v2057_v61, %v2038_v4  ;;  %v1793_v7 = vadd.f32 %v1753_v60, %v1591_v6  ;;  %v2104_v3 = vmul.f32 0.5, %v3045_v30  ;;  %v4162_v4 = vpop.permute.xlu2 %2196 }
 0x1a0   : > { %3046 = vtanh.f32 %v2073_v57 }
 0x1a1   : > { %v1987_v46 = vadd.f32 %v1947_v50, %v1793_v7  ;;  %v2120_v14 = vadd.f32 0.5, %v2104_v3  ;;  %v4174_v21 = vpop.permute.xlu1 %2194 }
 0x1a2   : > { %v1950_v34 = vpop.f32.mrf.mxu0 }
 0x1a3   : > { %v2039_v25 = vadd.f32 %v4013_v13, %v1987_v46  ;;  %v4138_v12 = vsel %vm2045_vm4, %v2120_v14, %v3045_v30  ;;  %v1554_v20 = vpop.f32.mrf.mxu2  ;;  %v4172_v30 = vpop.permute.xlu0 %2186 }
 0x1a4   : > { %2274 = vrot.lane.b32.xlu2 %v4138_v12, %s3128_s6  ;;  %v1592_v22 = vadd.f32 %v1554_v20, %v1395_v39 }
 0x1a5   : > { %v2058_v48 = vmul.f32 0.5, %v2039_v25  ;;  %v1360_v38 = vpop.f32.mrf.mxu1 }
 0x1a6   : > { %v3047_v43 = vpop.eup %3046  ;;  %v1756_v62 = vpop.f32.mrf.mxu3  ;;  %v1396_v44 = vadd.f32 %v1360_v38, %v3995_v18 }
 0x1a7   : > { %v2074_v42 = vsel %vm2045_vm4, %v2058_v48, %v2039_v25  ;;  %v2105_v41 = vmul.f32 0.5, %v3047_v43  ;;  %v1794_v19 = vadd.f32 %v1756_v62, %v1592_v22  ;;  %v4185_v22 = vpop.permute.xlu2 %2202 }
 0x1a8   : > { %3048 = vtanh.f32 %v2074_v42 }
 0x1a9   : > { %v2121_v37 = vadd.f32 0.5, %v2105_v41  ;;  %v1988_v31 = vadd.f32 %v1950_v34, %v1794_v19  ;;  %v4189_v42 = vpop.permute.xlu1 %2200 }
 0x1aa   : > { %v1953_v59 = vpop.f32.mrf.mxu0 }
 0x1ab   : > { %v4150_v27 = vsel %vm2045_vm4, %v2121_v37, %v3047_v43  ;;  %v2040_v40 = vadd.f32 %v4013_v13, %v1988_v31  ;;  %v1557_v63 = vpop.f32.mrf.mxu2  ;;  %v4187_v62 = vpop.permute.xlu0 %2192 }
 0x1ac   : > { %2276 = vrot.lane.b32.xlu0 %v4150_v27, %s3128_s6  ;;  %v1593_v1 = vadd.f32 %v1557_v63, %v1396_v44 }
 0x1ad   : > { %v2059_v54 = vmul.f32 0.5, %v2040_v40  ;;  %v1363_v51 = vpop.f32.mrf.mxu1 }
 0x1ae   : > { %v3049_v16 = vpop.eup %3048  ;;  %v1759_v11 = vpop.f32.mrf.mxu3  ;;  %v1397_v50 = vadd.f32 %v1363_v51, %v4006_v47 }
 0x1af   : > { %v2075_v52 = vsel %vm2045_vm4, %v2059_v54, %v2040_v40  ;;  %v1795_v10 = vadd.f32 %v1759_v11, %v1593_v1  ;;  %v2106_v18 = vmul.f32 0.5, %v3049_v16 }
 0x1b0   : > { %3050 = vtanh.f32 %v2075_v52 }
 0x1b1   : > { %v1989_v2 = vadd.f32 %v1953_v59, %v1795_v10  ;;  %v2122_v35 = vadd.f32 0.5, %v2106_v18 }
 0x1b2   : > { %v1956_v46 = vpop.f32.mrf.mxu0 }
 0x1b3   : > { %v2041_v53 = vadd.f32 %v4013_v13, %v1989_v2  ;;  %v4168_v61 = vsel %vm2045_vm4, %v2122_v35, %v3049_v16  ;;  %v1560_v6 = vpop.f32.mrf.mxu2  ;;  %v4199_v44 = vpop.permute.xlu0 %2198 }
 0x1b4   : > { %2278 = vrot.lane.b32.xlu1 %v4168_v61, %s3128_s6  ;;  %v1594_v57 = vadd.f32 %v1560_v6, %v1397_v50 }
 0x1b5   : > { %v2060_v60 = vmul.f32 0.5, %v2041_v53  ;;  %v2257_v63 = vpop.permute.xlu2 %2256 }
 0x1b6   : > { %v3051_v7 = vpop.eup %3050  ;;  %v1762_v3 = vpop.f32.mrf.mxu3  ;;  %v2303_v16 = vmul.f32 %v2257_v63, %v4040_v5 }
 0x1b7   : > { %v2076_v47 = vsel %vm2045_vm4, %v2060_v60, %v2041_v53  ;;  %v1796_v14 = vadd.f32 %v1762_v3, %v1594_v57  ;;  %v2107_v39 = vmul.f32 0.5, %v3051_v7 }
 0x1b8   : > { %3052 = vtanh.f32 %v2076_v47 }
 0x1b9   : > { %v1990_v25 = vadd.f32 %v1956_v46, %v1796_v14  ;;  %v2123_v34 = vadd.f32 0.5, %v2107_v39 }
 0x1bb   : > { %v2042_v20 = vadd.f32 %v4013_v13, %v1990_v25  ;;  %v4181_v48 = vsel %vm2045_vm4, %v2123_v34, %v3051_v7  ;;  %v4211_v52 = vpop.permute.xlu0 %2204 }
 0x1bc   : > { %2280 = vrot.lane.b32.xlu2 %v4181_v48, %s3128_s6 }
 0x1bd   : > { %v2061_v43 = vmul.f32 0.5, %v2042_v20 }
 0x1be   : > { %v3053_v38 = vpop.eup %3052 }
 0x1bf   : > { %v2077_v41 = vsel %vm2045_vm4, %v2061_v43, %v2042_v20  ;;  %v2108_v19 = vmul.f32 0.5, %v3053_v38 }
 0x1c0   : > { %3054 = vtanh.f32 %v2077_v41  ;;  %v2222_v41 = vmul.f32 %v4130_v8, %v4030_v55  ;;  %v2225_v8 = vmul.f32 %v4142_v17, %v4060_v9  ;;  %v2226_v17 = vmul.f32 %v4116_v58, %v4070_v56 }
 0x1c1   : > { %v2124_v13 = vadd.f32 0.5, %v2108_v19  ;;  %v2228_v58 = vmul.f32 %v4172_v30, %v4090_v32  ;;  %v2227_v30 = vmul.f32 %v4132_v15, %v4080_v33  ;;  %v2232_v15 = vmul.f32 %v4174_v21, %v4138_v12 }
 0x1c2   : > { %v2234_v21 = vmul.f32 %v4199_v44, %v4168_v61  ;;  %v2233_v44 = vmul.f32 %v4162_v4, %v4150_v27 }
 0x1c3   : > { %v4195_v37 = vsel %vm2045_vm4, %v2124_v13, %v3053_v38 }
 0x1c4   : > { %2282 = vrot.lane.b32.xlu0 %v4195_v37, %s3128_s6 }
 0x1c5   : > { %v2255_v40 = vpop.permute.xlu1 %2254 }
 0x1c6   : > { %v3055_v31 = vpop.eup %3054  ;;  %v2302_v59 = vmul.f32 %v2255_v40, %v4030_v55 }
 0x1c7   : > { %v2109_v54 = vmul.f32 0.5, %v3055_v31 }
 0x1c8   : > { %2334 = vrot.lane.b32.xlu2 %v2302_v59, %s3128_s6 }
 0x1c9   : > { %v2125_v1 = vadd.f32 0.5, %v2109_v54 }
 0x1cb   : > { %v4206_v11 = vsel %vm2045_vm4, %v2125_v1, %v3055_v31 }
 0x1cc   : > { %2336 = vrot.lane.b32.xlu0 %v2303_v16, %s3128_s6  ;;  %2284 = vrot.lane.b32.xlu1 %v4206_v11, %s3128_s6 }
 0x1ce   : > { %v2263_v10 = vpop.permute.xlu2 %2262 }
 0x1cf   : > { %v2306_v18 = vmul.f32 %v2263_v10, %v4070_v56  ;;  %v2223_v10 = vmul.f32 %v4156_v45, %v4040_v5 }
 0x1d4   : > { %2342 = vrot.lane.b32.xlu0 %v2306_v18, %s3128_s6 }
 0x1d6   : > { %v2259_v51 = vpop.permute.xlu0 %2258 }
 0x1d7   : > { %v2304_v2 = vmul.f32 %v2259_v51, %v4050_v29 }
 0x1d9   : > { %2338 = vrot.lane.b32.xlu1 %v2304_v2, %s3128_s6 }
 0x1de   : > { %v2261_v49 = vpop.permute.xlu1 %2260 }
 0x1df   : > { %v2305_v35 = vmul.f32 %v2261_v49, %v4060_v9 }
 0x1e1   : > { %2340 = vrot.lane.b32.xlu2 %v2305_v35, %s3128_s6 }
 0x1e6   : > { %v2269_v50 = vpop.permute.xlu2 %2268 }
 0x1e7   : > { %v2309_v53 = vmul.f32 %v2269_v50, %v4100_v26 }
 0x1e9   : > { %2348 = vrot.lane.b32.xlu0 %v2309_v53, %s3128_s6 }
 0x1ee   : > { %v2265_v6 = vpop.permute.xlu0 %2264 }
 0x1ef   : > { %v2307_v60 = vmul.f32 %v2265_v6, %v4080_v33  ;;  %v2224_v6 = vmul.f32 %v4118_v28, %v4050_v29  ;;  %v2229_v28 = vmul.f32 %v4158_v23, %v4100_v26  ;;  %v2231_v23 = vmul.f32 %v4187_v62, %v4124_v0 }
 0x1f0   : > { %v2230_v62 = vmul.f32 %v4146_v24, %v4110_v36  ;;  %v2235_v24 = vmul.f32 %v4189_v42, %v4181_v48  ;;  %v2237_v42 = vmul.f32 %v4211_v52, %v4206_v11  ;;  %v2236_v52 = vmul.f32 %v4185_v22, %v4195_v37 }
 0x1f1   : > { %2344 = vrot.lane.b32.xlu1 %v2307_v60, %s3128_s6 }
 0x1f6   : > { %v2267_v57 = vpop.permute.xlu1 %2266 }
 0x1f7   : > { %v2308_v7 = vmul.f32 %v2267_v57, %v4090_v32 }
 0x1f9   : > { %2346 = vrot.lane.b32.xlu2 %v2308_v7, %s3128_s6 }
 0x1fe   : > { %v2275_v3 = vpop.permute.xlu2 %2274 }
 0x1ff   : > { %v2312_v46 = vmul.f32 %v2275_v3, %v4138_v12 }
 0x201   : > { %2354 = vrot.lane.b32.xlu0 %v2312_v46, %s3128_s6 }
 0x206   : > { %v2271_v47 = vpop.permute.xlu0 %2270 }
 0x207   : > { %v2310_v14 = vmul.f32 %v2271_v47, %v4110_v36 }
 0x209   : > { %2350 = vrot.lane.b32.xlu1 %v2310_v14, %s3128_s6 }
 0x20e   : > { %v2273_v39 = vpop.permute.xlu1 %2272 }
 0x20f   : > { %v2311_v25 = vmul.f32 %v2273_v39, %v4124_v0 }
 0x211   : > { %2352 = vrot.lane.b32.xlu2 %v2311_v25, %s3128_s6 }
 0x216   : > { %v2281_v34 = vpop.permute.xlu2 %2280 }
 0x217   : > { %v2315_v20 = vmul.f32 %v2281_v34, %v4181_v48 }
 0x219   : > { %2360 = vrot.lane.b32.xlu0 %v2315_v20, %s3128_s6 }
 0x21e   : > { %v2277_v43 = vpop.permute.xlu0 %2276 }
 0x21f   : > { %v2313_v38 = vmul.f32 %v2277_v43, %v4150_v27 }
 0x221   : > { %2356 = vrot.lane.b32.xlu1 %v2313_v38, %s3128_s6 }
 0x222   : > { %v2335_v19 = vpop.permute.xlu2 %2334 }
 0x223   : > { %v4237_v13 = vadd.f32 %v2335_v19, %v2222_v41 }
 0x225   : > { %3056 = vtanh.f32 %v4237_v13 }
 0x226   : > { %v2279_v31 = vpop.permute.xlu1 %2278 }
 0x227   : > { %v2314_v40 = vmul.f32 %v2279_v31, %v4168_v61 }
 0x229   : > { %2358 = vrot.lane.b32.xlu2 %v2314_v40, %s3128_s6 }
 0x22b   : > { %v3057_v63 = vpop.eup %3056 }
 0x22c   : > { %2430 = vrot.lane.b32.xlu0 %v3057_v63, %s3128_s6 }
 0x236   : > { %v2283_v59 = vpop.permute.xlu0 %2282 }
 0x237   : > { %v2316_v54 = vmul.f32 %v2283_v59, %v4195_v37 }
 0x239   : > { %2362 = vrot.lane.b32.xlu1 %v2316_v54, %s3128_s6 }
 0x23b   : > { %v2341_v1 = vpop.permute.xlu2 %2340 }
 0x23c   : > { %v4247_v16 = vadd.f32 %v2341_v1, %v2225_v8 }
 0x23e   : > { %3058 = vtanh.f32 %v4247_v16  ;;  %v2337_v18 = vpop.permute.xlu0 %2336  ;;  %v2285_v51 = vpop.permute.xlu1 %2284 }
 0x23f   : > { %v4252_v2 = vadd.f32 %v2337_v18, %v2223_v10  ;;  %v2317_v49 = vmul.f32 %v2285_v51, %v4206_v11 }
 0x241   : > { %3060 = vtanh.f32 %v4252_v2  ;;  %2364 = vrot.lane.b32.xlu2 %v2317_v49, %s3128_s6 }
 0x244   : > { %v3059_v35 = vpop.eup %3058 }
 0x245   : > { %2436 = vrot.lane.b32.xlu0 %v3059_v35, %s3128_s6 }
 0x246   : > { %v2343_v50 = vpop.permute.xlu0 %2342 }
 0x247   : > { %v3061_v45 = vpop.eup %3060  ;;  %v4260_v53 = vadd.f32 %v2343_v50, %v2226_v17 }
 0x248   : > { %2432 = vrot.lane.b32.xlu1 %v3061_v45, %s3128_s6 }
 0x249   : > { %3062 = vtanh.f32 %v4260_v53 }
 0x24b   : > { %v2339_v60 = vpop.permute.xlu1 %2338 }
 0x24c   : > { %v4266_v57 = vadd.f32 %v2339_v60, %v2224_v6 }
 0x24e   : > { %3064 = vtanh.f32 %v4266_v57 }
 0x24f   : > { %v3063_v7 = vpop.eup %3062 }
 0x250   : > { %2438 = vrot.lane.b32.xlu1 %v3063_v7, %s3128_s6 }
 0x253   : > { %v2347_v3 = vpop.permute.xlu2 %2346 }
 0x254   : > { %v3065_v46 = vpop.eup %3064  ;;  %v4272_v47 = vadd.f32 %v2347_v3, %v2228_v58 }
 0x255   : > { %2434 = vrot.lane.b32.xlu2 %v3065_v46, %s3128_s6 }
 0x256   : > { %3066 = vtanh.f32 %v4272_v47 }
 0x25b   : > { %v2349_v14 = vpop.permute.xlu0 %2348 }
 0x25c   : > { %v3067_v39 = vpop.eup %3066  ;;  %v4278_v25 = vadd.f32 %v2349_v14, %v2229_v28 }
 0x25d   : > { %2442 = vrot.lane.b32.xlu0 %v3067_v39, %s3128_s6 }
 0x25e   : > { %3068 = vtanh.f32 %v4278_v25 }
 0x263   : > { %v2345_v34 = vpop.permute.xlu1 %2344 }
 0x264   : > { %v3069_v20 = vpop.eup %3068  ;;  %v4284_v43 = vadd.f32 %v2345_v34, %v2227_v30 }
 0x265   : > { %2444 = vrot.lane.b32.xlu1 %v3069_v20, %s3128_s6 }
 0x266   : > { %3070 = vtanh.f32 %v4284_v43 }
 0x26b   : > { %v2353_v38 = vpop.permute.xlu2 %2352 }
 0x26c   : > { %v3071_v41 = vpop.eup %3070  ;;  %v4290_v19 = vadd.f32 %v2353_v38, %v2231_v23 }
 0x26d   : > { %2440 = vrot.lane.b32.xlu2 %v3071_v41, %s3128_s6 }
 0x26e   : > { %3072 = vtanh.f32 %v4290_v19 }
 0x273   : > { %v2355_v31 = vpop.permute.xlu0 %2354 }
 0x274   : > { %v3073_v40 = vpop.eup %3072  ;;  %v4296_v63 = vadd.f32 %v2355_v31, %v2232_v15 }
 0x275   : > { %2448 = vrot.lane.b32.xlu0 %v3073_v40, %s3128_s6 }
 0x276   : > { %3074 = vtanh.f32 %v4296_v63 }
 0x27b   : > { %v2351_v59 = vpop.permute.xlu1 %2350 }
 0x27c   : > { %v3075_v54 = vpop.eup %3074  ;;  %v4302_v8 = vadd.f32 %v2351_v59, %v2230_v62 }
 0x27d   : > { %2450 = vrot.lane.b32.xlu1 %v3075_v54, %s3128_s6 }
 0x27e   : > { %3076 = vtanh.f32 %v4302_v8 }
 0x283   : > { %v2359_v1 = vpop.permute.xlu2 %2358 }
 0x284   : > { %v3077_v10 = vpop.eup %3076  ;;  %v4308_v18 = vadd.f32 %v2359_v1, %v2234_v21 }
 0x285   : > { %2446 = vrot.lane.b32.xlu2 %v3077_v10, %s3128_s6 }
 0x286   : > { %3078 = vtanh.f32 %v4308_v18 }
 0x28b   : > { %v2361_v51 = vpop.permute.xlu0 %2360 }
 0x28c   : > { %v3079_v49 = vpop.eup %3078  ;;  %v4314_v35 = vadd.f32 %v2361_v51, %v2235_v24 }
 0x28d   : > { %2454 = vrot.lane.b32.xlu0 %v3079_v49, %s3128_s6 }
 0x28e   : > { %3080 = vtanh.f32 %v4314_v35 }
 0x293   : > { %v2357_v17 = vpop.permute.xlu1 %2356 }
 0x294   : > { %v3081_v50 = vpop.eup %3080  ;;  %v4320_v45 = vadd.f32 %v2357_v17, %v2233_v44 }
 0x295   : > { %2456 = vrot.lane.b32.xlu1 %v3081_v50, %s3128_s6 }
 0x296   : > { %3082 = vtanh.f32 %v4320_v45 }
 0x29b   : > { %v2365_v6 = vpop.permute.xlu2 %2364 }
 0x29c   : > { %v3083_v60 = vpop.eup %3082  ;;  %v4326_v7 = vadd.f32 %v2365_v6, %v2237_v42 }
 0x29d   : > { %2452 = vrot.lane.b32.xlu2 %v3083_v60, %s3128_s6 }
 0x29e   : > { %3084 = vtanh.f32 %v4326_v7  ;;  %v2431_v4 = vpop.permute.xlu0 %2430 }
 0x29f   : > { %v2478_v58 = vmul.f32 %v2431_v4, %v4030_v55 }
 0x2a1   : > { %2510 = vrot.lane.b32.xlu1 %v2478_v58, %s3129_s8 }
 0x2a4   : > { %v3085_v3 = vpop.eup %3084 }
 0x2a5   : > { %2460 = vrot.lane.b32.xlu0 %v3085_v3, %s3128_s6 }
 0x2ab   : > { %v2363_v46 = vpop.permute.xlu1 %2362 }
 0x2ac   : > { %v4335_v28 = vadd.f32 %v2363_v46, %v2236_v52 }
 0x2ae   : > { %3086 = vtanh.f32 %v4335_v28 }
 0x2af   : > { %v2435_v14 = vpop.permute.xlu2 %2434 }
 0x2b0   : > { %v2480_v39 = vmul.f32 %v2435_v14, %v4050_v29 }
 0x2b2   : > { %2514 = vrot.lane.b32.xlu0 %v2480_v39, %s3129_s8 }
 0x2b4   : > { %v3087_v55 = vpop.eup %3086 }
 0x2b5   : > { %2458 = vrot.lane.b32.xlu2 %v3087_v55, %s3128_s6 }
 0x2b7   : > { %v2437_v30 = vpop.permute.xlu0 %2436 }
 0x2b8   : > { %v2481_v34 = vmul.f32 %v2437_v30, %v4060_v9 }
 0x2ba   : > { %v2433_v20 = vpop.permute.xlu1 %2432  ;;  %2516 = vrot.lane.b32.xlu1 %v2481_v34, %s3129_s8 }
 0x2bb   : > { %v2479_v22 = vmul.f32 %v2433_v20, %v4040_v5 }
 0x2bd   : > { %2512 = vrot.lane.b32.xlu2 %v2479_v22, %s3129_s8 }
 0x2c2   : > { %v2439_v23 = vpop.permute.xlu1 %2438 }
 0x2c3   : > { %v2482_v38 = vmul.f32 %v2439_v23, %v4070_v56 }
 0x2c5   : > { %2518 = vrot.lane.b32.xlu2 %v2482_v38, %s3129_s8 }
 0x2c7   : > { %v2441_v29 = vpop.permute.xlu2 %2440 }
 0x2c8   : > { %v2483_v41 = vmul.f32 %v2441_v29, %v4080_v33 }
 0x2ca   : > { %2520 = vrot.lane.b32.xlu0 %v2483_v41, %s3129_s8 }
 0x2cf   : > { %v2443_v15 = vpop.permute.xlu0 %2442 }
 0x2d0   : > { %v2484_v9 = vmul.f32 %v2443_v15, %v4090_v32 }
 0x2d2   : > { %2522 = vrot.lane.b32.xlu1 %v2484_v9, %s3129_s8 }
 0x2d7   : > { %v2445_v31 = vpop.permute.xlu1 %2444 }
 0x2d8   : > { %v2485_v5 = vmul.f32 %v2445_v31, %v4100_v26 }
 0x2da   : > { %2524 = vrot.lane.b32.xlu2 %v2485_v5, %s3129_s8 }
 0x2df   : > { %v2447_v40 = vpop.permute.xlu2 %2446 }
 0x2e0   : > { %v2486_v56 = vmul.f32 %v2447_v40, %v4110_v36 }
 0x2e2   : > { %2526 = vrot.lane.b32.xlu0 %v2486_v56, %s3129_s8 }
 0x2e7   : > { %v2449_v62 = vpop.permute.xlu0 %2448 }
 0x2e8   : > { %v2487_v33 = vmul.f32 %v2449_v62, %v4124_v0 }
 0x2ea   : > { %2528 = vrot.lane.b32.xlu1 %v2487_v33, %s3129_s8 }
 0x2ef   : > { %v2451_v59 = vpop.permute.xlu1 %2450 }
 0x2f0   : > { %v2488_v32 = vmul.f32 %v2451_v59, %v4138_v12 }
 0x2f2   : > { %2530 = vrot.lane.b32.xlu2 %v2488_v32, %s3129_s8 }
 0x2f7   : > { %v2453_v54 = vpop.permute.xlu2 %2452 }
 0x2f8   : > { %v2489_v26 = vmul.f32 %v2453_v54, %v4150_v27 }
 0x2fa   : > { %2532 = vrot.lane.b32.xlu0 %v2489_v26, %s3129_s8 }
 0x2ff   : > { %v2455_v21 = vpop.permute.xlu0 %2454 }
 0x300   : > { %v2490_v36 = vmul.f32 %v2455_v21, %v4168_v61 }
 0x302   : > { %2534 = vrot.lane.b32.xlu1 %v2490_v36, %s3129_s8 }
 0x307   : > { %v2457_v1 = vpop.permute.xlu1 %2456 }
 0x308   : > { %v2491_v0 = vmul.f32 %v2457_v1, %v4181_v48 }
 0x30a   : > { %2536 = vrot.lane.b32.xlu2 %v2491_v0, %s3129_s8 }
 0x30f   : > { %v2459_v10 = vpop.permute.xlu2 %2458 }
 0x310   : > { %v2492_v12 = vmul.f32 %v2459_v10, %v4195_v37 }
 0x312   : > { %2538 = vrot.lane.b32.xlu0 %v2492_v12, %s3129_s8 }
 0x313   : > { %v2511_v27 = vpop.permute.xlu1 %2510 }
 0x314   : > { %v2559_v61 = vsel %vm2558_vm5, %v2511_v27, %v4237_v13 }
 0x315   : > { %2576 = vst.msk [vmem:[%s4372_s12] sm:$0xff] %vm2575_vm6, %v2559_v61 }
 0x317   : > { %v2513_v48 = vpop.permute.xlu2 %2512  ;;  %v2461_v37 = vpop.permute.xlu0 %2460 }
 0x318   : > { %v2560_v24 = vsel %vm2558_vm5, %v2513_v48, %v4252_v2  ;;  %v2493_v51 = vmul.f32 %v2461_v37, %v4206_v11 }
 0x319   : > { %2577 = vst.msk [vmem:[%s4372_s12 + $0x8] sm:$0xff] %vm2575_vm6, %v2560_v24 }
 0x31a   : > { %2540 = vrot.lane.b32.xlu1 %v2493_v51, %s3129_s8 }
 0x31f   : > { %v2519_v49 = vpop.permute.xlu2 %2518 }
 0x320   : > { %v2563_v13 = vsel %vm2558_vm5, %v2519_v49, %v4260_v53 }
 0x321   : > { %2580 = vst.msk [vmem:[%s4372_s12 + $0x20] sm:$0xff] %vm2575_vm6, %v2563_v13 }
 0x324   : > { %v2515_v44 = vpop.permute.xlu0 %2514 }
 0x325   : > { %v2561_v17 = vsel %vm2558_vm5, %v2515_v44, %v4266_v57 }
 0x326   : > { %2578 = vst.msk [vmem:[%s4372_s12 + $0x10] sm:$0xff] %vm2575_vm6, %v2561_v17 }
 0x32c   : > { %v2517_v11 = vpop.permute.xlu1 %2516 }
 0x32d   : > { %v2562_v2 = vsel %vm2558_vm5, %v2517_v11, %v4247_v16 }
 0x32e   : > { %2579 = vst.msk [vmem:[%s4372_s12 + $0x18] sm:$0xff] %vm2575_vm6, %v2562_v2 }
 0x334   : > { %v2525_v50 = vpop.permute.xlu2 %2524 }
 0x335   : > { %v2566_v53 = vsel %vm2558_vm5, %v2525_v50, %v4278_v25 }
 0x336   : > { %2583 = vst.msk [vmem:[%s4372_s12 + $0x38] sm:$0xff] %vm2575_vm6, %v2566_v53 }
 0x33c   : > { %v2521_v42 = vpop.permute.xlu0 %2520 }
 0x33d   : > { %v2564_v57 = vsel %vm2558_vm5, %v2521_v42, %v4284_v43 }
 0x33e   : > { %2581 = vst.msk [vmem:[%s4372_s12 + $0x28] sm:$0xff] %vm2575_vm6, %v2564_v57 }
 0x344   : > { %v2523_v6 = vpop.permute.xlu1 %2522 }
 0x345   : > { %v2565_v16 = vsel %vm2558_vm5, %v2523_v6, %v4272_v47 }
 0x346   : > { %2582 = vst.msk [vmem:[%s4372_s12 + $0x30] sm:$0xff] %vm2575_vm6, %v2565_v16 }
 0x34c   : > { %v2531_v60 = vpop.permute.xlu2 %2530 }
 0x34d   : > { %v2569_v25 = vsel %vm2558_vm5, %v2531_v60, %v4296_v63 }
 0x34e   : > { %2586 = vst.msk [vmem:[%s4372_s12 + $0x50] sm:$0xff] %vm2575_vm6, %v2569_v25 }
 0x354   : > { %v2527_v4 = vpop.permute.xlu0 %2526 }
 0x355   : > { %v2567_v43 = vsel %vm2558_vm5, %v2527_v4, %v4302_v8 }
 0x356   : > { %2584 = vst.msk [vmem:[%s4372_s12 + $0x40] sm:$0xff] %vm2575_vm6, %v2567_v43 }
 0x35c   : > { %v2529_v58 = vpop.permute.xlu1 %2528 }
 0x35d   : > { %v2568_v47 = vsel %vm2558_vm5, %v2529_v58, %v4290_v19 }
 0x35e   : > { %2585 = vst.msk [vmem:[%s4372_s12 + $0x48] sm:$0xff] %vm2575_vm6, %v2568_v47 }
 0x364   : > { %v2537_v3 = vpop.permute.xlu2 %2536 }
 0x365   : > { %v2572_v63 = vsel %vm2558_vm5, %v2537_v3, %v4314_v35 }
 0x366   : > { %2589 = vst.msk [vmem:[%s4372_s12 + $0x68] sm:$0xff] %vm2575_vm6, %v2572_v63 }
 0x36c   : > { %v2533_v52 = vpop.permute.xlu0 %2532 }
 0x36d   : > { %v2570_v8 = vsel %vm2558_vm5, %v2533_v52, %v4320_v45 }
 0x36e   : > { %2587 = vst.msk [vmem:[%s4372_s12 + $0x58] sm:$0xff] %vm2575_vm6, %v2570_v8 }
 0x374   : > { %v2535_v46 = vpop.permute.xlu1 %2534 }
 0x375   : > { %v2571_v14 = vsel %vm2558_vm5, %v2535_v46, %v4308_v18 }
 0x376   : > { %2588 = vst.msk [vmem:[%s4372_s12 + $0x60] sm:$0xff] %vm2575_vm6, %v2571_v14 }
 0x384   : > { %v2539_v19 = vpop.permute.xlu0 %2538 }
 0x385   : > { %v2573_v39 = vsel %vm2558_vm5, %v2539_v19, %v4335_v28 }
 0x386   : > { %2590 = vst.msk [vmem:[%s4372_s12 + $0x70] sm:$0xff] %vm2575_vm6, %v2573_v39 }
 0x38c   : > { %v2541_v35 = vpop.permute.xlu1 %2540 }
 0x38d   : > { %v2574_v55 = vsel %vm2558_vm5, %v2541_v35, %v4326_v7 }
 0x38e   : > { %2591 = vst.msk [vmem:[%s4372_s12 + $0x78] sm:$0xff] %vm2575_vm6, %v2574_v55 }
 0x38f PF: > { %s14_s19 = sadd.s32 1, %s3126_s19   ;;  %s4475_s15 = smov %s3118_s17 }
 0x390   : > { %p11_p7 = scmp.ge.s32.totalorder %s14_s19, 6   ;;  %s4476_s16 = smov %s3122_s18 }
 0x391   : > { %s4477_s17 = smov %s4480_s20  ;;  %s4478_s18 = smov %s4484_s21 }
 0x392   :  { %13 = sbr.rel (!%p11_p7) target bundleno = 3 (0x3), region = 80 }

</bundles_post_ra>
